<compile_context>
chip_gen: v7x
topology: tpu7x:2x2x1
jax: 0.10.0
libtpu: 0.0.40
codegen_flags: <defaults>
</compile_context>

<pallas_src>
import jax
import jax.numpy as jnp
import numpy as np
from jax import lax
from jax.experimental import pallas as pl
from jax.experimental.pallas import tpu as pltpu


# -----------------------------------------------------------------------------
# Pallas kernel
# -----------------------------------------------------------------------------
def make_lstm_kernel(num_layers, T, H, use_roll, mxu_dtype,
                     gemm_chunk=8, static_unroll_max_t=16, fori_unroll=8):
    """Build the kernel for fixed layer count / seq length / hidden size.

    use_roll=True  : H % 128 != 0 -> full-lane (Bb, 4H) state update with
                     pltpu.roll gate alignment; weights are zero-row padded.
    use_roll=False : H % 128 == 0 -> gate slices are already lane-aligned.
    """
    four_h = 4 * H

    def kernel(*refs):
        # refs = [x_ref, (w_ih_t, w_hh_t, b) * num_layers, wfc_t, bfc,
        #         out_ref, seq_scratch, gates_scratch]
        x_ref = refs[0]
        idx = 1
        layer_refs = []
        for _ in range(num_layers):
            layer_refs.append(refs[idx:idx + 3])
            idx += 3
        wfc_ref, bfc_ref = refs[idx], refs[idx + 1]
        out_ref = refs[idx + 2]
        seq_ref = refs[idx + 3]   # VMEM (T, Bb, seq_w): inter-layer hidden sequence
        gin_ref = refs[idx + 4]   # VMEM (T, Bb, 4H):   hoisted input-projection gates

        Bb = x_ref.shape[1]
        state_w = four_h if use_roll else H

        # Lane mask selecting the 'g' (tanh) gate lanes; hoisted, computed once.
        lane = lax.broadcasted_iota(jnp.int32, (Bb, four_h), 1)
        g_lanes = (lane >= 2 * H) & (lane < 3 * H)

        h_last = jnp.zeros((Bb, state_w), jnp.float32)
        for l, (wih_ref, whh_ref, b_ref) in enumerate(layer_refs):
            wih = wih_ref[...]            # (in_l, 4H)      [mxu_dtype]
            whh = whh_ref[...]            # (H or 4H, 4H)   [mxu_dtype]
            b = b_ref[...]                # (1, 4H)         [f32], = b_ih + b_hh
            last_layer = l == num_layers - 1
            src_ref = x_ref if l == 0 else seq_ref
            in_l = src_ref.shape[-1]

            # ---- Hoisted input projection, off the serial critical path.
            #      Written in T-chunks so the GEMM result never blows the vreg
            #      budget; bias folded in; stored in mxu_dtype (bf16 halves the
            #      dominant VMEM + per-step vld traffic). ----
            for c0 in range(0, T, gemm_chunk):
                cs = min(gemm_chunk, T - c0)
                blk = src_ref[c0:c0 + cs].reshape(cs * Bb, in_l)
                g = jnp.dot(blk.astype(mxu_dtype), wih,
                            preferred_element_type=jnp.float32) + b
                gin_ref[c0:c0 + cs] = g.reshape(cs, Bb, four_h).astype(gin_ref.dtype)

            # ---- Serial recurrence: one small matmul + full-lane elementwise. ----
            def step(t, carry):
                h_st, c_st = carry
                gates = gin_ref[t].astype(jnp.float32) + jnp.dot(
                    h_st.astype(mxu_dtype), whh,
                    preferred_element_type=jnp.float32)            # (Bb, 4H) f32
                # Single EUP pass: sigmoid(x) = 0.5*(1 + tanh(x/2)).
                pre = jnp.where(g_lanes, gates, 0.5 * gates)
                th = jnp.tanh(pre)
                act = jnp.where(g_lanes, th, 0.5 * th + 0.5)        # [i|f|g|o]
                if use_roll:
                    # Full-lane state update; gates aligned via XLU rolls
                    # (positive shifts only).  c lives in the 'f' lane group,
                    # h in the 'o' lane group; other lane groups carry finite
                    # junk that the zero-padded weight rows annihilate.
                    ig = act * pltpu.roll(act, 2 * H, axis=1)        # [0:H)  = i*g
                    fc = act * c_st                                  # [H:2H) = f*c
                    cn = ig + pltpu.roll(fc, 3 * H, axis=1)          # [0:H)  = c_new
                    tc = jnp.tanh(cn)                                # [0:H)  = tanh(c_new)
                    h_new = act * pltpu.roll(tc, 3 * H, axis=1)      # [3H:)  = h_new
                    c_new = pltpu.roll(cn, H, axis=1)                # [H:2H) = c_new
                else:
                    # H % 128 == 0: these slices are whole-vreg selections.
                    i_g = act[:, 0 * H:1 * H]
                    f_g = act[:, 1 * H:2 * H]
                    g_g = act[:, 2 * H:3 * H]
                    o_g = act[:, 3 * H:4 * H]
                    c_new = f_g * c_st + i_g * g_g
                    h_new = o_g * jnp.tanh(c_new)
                if not last_layer:          # top layer's per-step h is never read
                    seq_ref[t] = h_new.astype(seq_ref.dtype)
                return h_new, c_new

            h0 = jnp.zeros((Bb, state_w), jnp.float32)
            c0s = jnp.zeros((Bb, state_w), jnp.float32)
            if T <= static_unroll_max_t:
                carry = (h0, c0s)
                for t in range(T):          # static unroll for small T
                    carry = step(t, carry)
                h_last = carry[0]
            else:
                # Large T: bounded live ranges, LLO still sees `fori_unroll` steps.
                h_last, _ = lax.fori_loop(0, T, step, (h0, c0s), unroll=fori_unroll)

        # Final Linear on the last hidden state; wfc is lane-padded to 128 output
        # columns (and zero-row padded in roll mode) -> lane-dense unmasked store.
        out = (jnp.dot(h_last, wfc_ref[...], preferred_element_type=jnp.float32)
               + bfc_ref[...])
        out_ref[...] = out.astype(out_ref.dtype)

    return kernel


# -----------------------------------------------------------------------------
# Wrapper
# -----------------------------------------------------------------------------
def lstm_forecaster_pallas(x, params, num_layers, hidden_size, output_size,
                           *, mxu_dtype=jnp.bfloat16, num_batch_blocks=1):
    """x: (B, T, input_size) float32.  Returns (B, output_size) float32.

    mxu_dtype        : bf16 (default, native MXU rate) or f32 (validation path).
    num_batch_blocks : grid size over batch; set 2 on v7x to use both TensorCores.
    """
    B, T, input_size = x.shape
    H = hidden_size
    four_h = 4 * H
    use_roll = (H % 128) != 0                      # lane-align gates via XLU rolls
    OP = ((output_size + 127) // 128) * 128        # lane-dense FC output width

    nb = num_batch_blocks
    Bb = ((-(-B // nb)) + 7) // 8 * 8              # per-block batch, sublane multiple
    Bp = Bb * nb

    x_tbi = jnp.transpose(x, (1, 0, 2)).astype(mxu_dtype)        # (T, B, I)
    if Bp != B:
        x_tbi = jnp.pad(x_tbi, ((0, 0), (0, Bp - B), (0, 0)))    # (T, Bp, I)

    flat_inputs = [x_tbi]
    in_specs = [pl.BlockSpec((T, Bb, input_size), lambda b: (0, b, 0))]
    for l in range(num_layers):
        w_ih, w_hh, b_ih, b_hh = params["lstm"][l]
        wih_t = w_ih.T.astype(jnp.float32)         # (in_l, 4H)
        whh_t = w_hh.T.astype(jnp.float32)         # (H, 4H)
        if use_roll:
            # Zero-row padding: h/seq tiles are (Bb, 4H) with valid data only in
            # the 'o' lane group -> padded rows make the matmul exact.
            whh_t = jnp.zeros((four_h, four_h), jnp.float32).at[3 * H:].set(whh_t)
            if l > 0:
                wih_t = jnp.zeros((four_h, four_h), jnp.float32).at[3 * H:].set(wih_t)
        wih_m = wih_t.astype(mxu_dtype)
        whh_m = whh_t.astype(mxu_dtype)
        bias = (b_ih + b_hh)[None, :].astype(jnp.float32)        # (1, 4H)
        flat_inputs += [wih_m, whh_m, bias]
        in_specs += [pl.BlockSpec(wih_m.shape, lambda b: (0, 0)),
                     pl.BlockSpec(whh_m.shape, lambda b: (0, 0)),
                     pl.BlockSpec(bias.shape, lambda b: (0, 0))]

    wfc, bfc = params["fc"]
    fc_rows = four_h if use_roll else H
    wfc_p = jnp.zeros((fc_rows, OP), jnp.float32)
    wfc_p = wfc_p.at[(3 * H if use_roll else 0):, :output_size].set(
        wfc.T.astype(jnp.float32))
    bfc_p = jnp.zeros((1, OP), jnp.float32).at[0, :output_size].set(
        bfc.astype(jnp.float32))
    flat_inputs += [wfc_p, bfc_p]
    in_specs += [pl.BlockSpec((fc_rows, OP), lambda b: (0, 0)),
                 pl.BlockSpec((1, OP), lambda b: (0, 0))]

    out_spec = pl.BlockSpec((Bb, OP), lambda b: (b, 0))
    seq_w = four_h if use_roll else H

    kernel = make_lstm_kernel(num_layers, T, H, use_roll, mxu_dtype)

    # TODO(synk): for production T/H where (T,Bb,4H)+(T,Bb,seq_w) scratch no longer
    # fits (esp. v7x 64 MiB VMEM), stream x / the inter-layer sequence in T-chunks
    # from HBM with double-buffered DMA (pltpu.emit_pipeline); on v5e/v6e the limit
    # below can instead be raised toward ~100 MiB before chunking is needed.
    out = pl.pallas_call(
        kernel,
        grid=(nb,),
        out_shape=jax.ShapeDtypeStruct((Bp, OP), jnp.float32),
        in_specs=in_specs,
        out_specs=out_spec,
        scratch_shapes=[pltpu.VMEM((T, Bb, seq_w), mxu_dtype),     # inter-layer seq
                        pltpu.VMEM((T, Bb, four_h), mxu_dtype)],   # hoisted gates
        compiler_params=pltpu.CompilerParams(
            dimension_semantics=("parallel",),          # v7x: batch across both TCs
            vmem_limit_bytes=48 * 1024 * 1024),         # headroom on v7x's 64 MiB
    )(*flat_inputs)
    return out[:B, :output_size]


# -----------------------------------------------------------------------------
# Pure-JAX reference (mirrors torch.nn.LSTM + Linear semantics, f32)
# -----------------------------------------------------------------------------
def lstm_forecaster_ref(x, params, num_layers, hidden_size, output_size):
    B, T, _ = x.shape
    H = hidden_size
    seq = x.astype(jnp.float32)                                  # (B, T, in)
    for l in range(num_layers):
        w_ih, w_hh, b_ih, b_hh = params["lstm"][l]

        def step(carry, x_t, w_ih=w_ih, w_hh=w_hh, b_ih=b_ih, b_hh=b_hh):
            h, c = carry
            gates = x_t @ w_ih.T + b_ih + h @ w_hh.T + b_hh
            i = jax.nn.sigmoid(gates[:, 0 * H:1 * H])
            f = jax.nn.sigmoid(gates[:, 1 * H:2 * H])
            g = jnp.tanh(gates[:, 2 * H:3 * H])
            o = jax.nn.sigmoid(gates[:, 3 * H:4 * H])
            c = f * c + i * g
            h = o * jnp.tanh(c)
            return (h, c), h

        h0 = jnp.zeros((B, H), jnp.float32)
        c0 = jnp.zeros((B, H), jnp.float32)
        (_, _), hs = lax.scan(step, (h0, c0), jnp.transpose(seq, (1, 0, 2)))
        seq = jnp.transpose(hs, (1, 0, 2))                       # (B, T, H)

    wfc, bfc = params["fc"]
    return seq[:, -1, :] @ wfc.T + bfc


# -----------------------------------------------------------------------------
# Deterministic parameter init (PyTorch-style uniform(-1/sqrt(H), 1/sqrt(H)))
# -----------------------------------------------------------------------------
def init_params(key, input_size, hidden_size, num_layers, output_size):
    H = hidden_size
    k = 1.0 / np.sqrt(H)
    params = {"lstm": []}
    for l in range(num_layers):
        in_l = input_size if l == 0 else H
        key, k1, k2, k3, k4 = jax.random.split(key, 5)
        w_ih = jax.random.uniform(k1, (4 * H, in_l), jnp.float32, -k, k)
        w_hh = jax.random.uniform(k2, (4 * H, H), jnp.float32, -k, k)
        b_ih = jax.random.uniform(k3, (4 * H,), jnp.float32, -k, k)
        b_hh = jax.random.uniform(k4, (4 * H,), jnp.float32, -k, k)
        params["lstm"].append((w_ih, w_hh, b_ih, b_hh))
    key, k1, k2 = jax.random.split(key, 3)
    wfc = jax.random.uniform(k1, (output_size, H), jnp.float32, -k, k)
    bfc = jax.random.uniform(k2, (output_size,), jnp.float32, -k, k)
    params["fc"] = (wfc, bfc)
    return params


# -----------------------------------------------------------------------------
if __name__ == "__main__":
    # Small shapes consistent with the module's forward.
    B, T = 4, 8                 # batch, sequence length
    input_size = 4
    hidden_size = 32
    num_layers = 2
    output_size = 1

    key = jax.random.PRNGKey(0)
    key, kx = jax.random.split(key)
    x = jax.random.normal(kx, (B, T, input_size), jnp.float32)
    params = init_params(key, input_size, hidden_size, num_layers, output_size)

    ref = jax.block_until_ready(
        lstm_forecaster_ref(x, params, num_layers, hidden_size, output_size))

    # (1) f32-operand path, 2 batch blocks ('parallel' grid, v7x both-TC layout):
    #     tight functional validation of the roll/single-tanh kernel.
    out_f32 = jax.block_until_ready(lstm_forecaster_pallas(
        x, params, num_layers, hidden_size, output_size,
        mxu_dtype=jnp.float32, num_batch_blocks=2))
    assert out_f32.shape == (B, output_size)
    np.testing.assert_allclose(np.asarray(out_f32), np.asarray(ref),
                               rtol=1e-4, atol=1e-4)

    # (2) default optimized path: bf16 MXU operands + bf16 gate/seq scratch.
    #     bf16-level tolerance (per review, looser than the f32 check).
    out_bf16 = jax.block_until_ready(lstm_forecaster_pallas(
        x, params, num_layers, hidden_size, output_size))
    assert out_bf16.shape == (B, output_size)
    np.testing.assert_allclose(np.asarray(out_bf16), np.asarray(ref),
                               rtol=5e-2, atol=5e-2)

    print("KERNEL_OK")
</pallas_src>

<mosaic_0001>
module attributes {stable_mosaic.version = 11 : i64} {
  func.func @kernel(%arg0: i32, %arg1: memref<8x8x4xf32, #tpu.memory_space<vmem>>, %arg2: memref<4x128xf32, #tpu.memory_space<vmem>>, %arg3: memref<128x128xf32, #tpu.memory_space<vmem>>, %arg4: memref<1x128xf32, #tpu.memory_space<vmem>>, %arg5: memref<128x128xf32, #tpu.memory_space<vmem>>, %arg6: memref<128x128xf32, #tpu.memory_space<vmem>>, %arg7: memref<1x128xf32, #tpu.memory_space<vmem>>, %arg8: memref<128x128xf32, #tpu.memory_space<vmem>>, %arg9: memref<1x128xf32, #tpu.memory_space<vmem>>, %arg10: memref<8x128xf32, #tpu.memory_space<vmem>>, %arg11: memref<8x8x128xf32, #tpu.memory_space<vmem>>, %arg12: memref<8x8x128xf32, #tpu.memory_space<vmem>>) attributes {dimension_semantics = [#tpu.dimension_semantics<parallel>], iteration_bounds = array<i64: 2>, scalar_prefetch = 0 : i64, scratch_operands = 2 : i64, tpu.core_type = #tpu.core_type<tc>, window_params = [{transform_indices = @transform_0, window_bounds = array<i64: 8, 8, 4>}, {pipeline_mode = #tpu.pipeline_mode<synchronous>, transform_indices = @transform_1, window_bounds = array<i64: 4, 128>}, {pipeline_mode = #tpu.pipeline_mode<synchronous>, transform_indices = @transform_2, window_bounds = array<i64: 128, 128>}, {pipeline_mode = #tpu.pipeline_mode<synchronous>, transform_indices = @transform_3, window_bounds = array<i64: 1, 128>}, {pipeline_mode = #tpu.pipeline_mode<synchronous>, transform_indices = @transform_4, window_bounds = array<i64: 128, 128>}, {pipeline_mode = #tpu.pipeline_mode<synchronous>, transform_indices = @transform_5, window_bounds = array<i64: 128, 128>}, {pipeline_mode = #tpu.pipeline_mode<synchronous>, transform_indices = @transform_6, window_bounds = array<i64: 1, 128>}, {pipeline_mode = #tpu.pipeline_mode<synchronous>, transform_indices = @transform_7, window_bounds = array<i64: 128, 128>}, {pipeline_mode = #tpu.pipeline_mode<synchronous>, transform_indices = @transform_8, window_bounds = array<i64: 1, 128>}, {transform_indices = @transform_9, window_bounds = array<i64: 8, 128>}]} {
    %0 = tpu.iota {dimensions = array<i32: 1>} : vector<8x128xi32>
    %c64_i32 = arith.constant 64 : i32
    %1 = vector.broadcast %c64_i32 : i32 to vector<8x128xi32>
    %2 = arith.cmpi sge, %0, %1 : vector<8x128xi32>
    %c96_i32 = arith.constant 96 : i32
    %3 = vector.broadcast %c96_i32 : i32 to vector<8x128xi32>
    %4 = arith.cmpi slt, %0, %3 : vector<8x128xi32>
    %5 = arith.andi %2, %4 : vector<8x128xi1>
    %c0 = arith.constant 0 : index
    %c0_0 = arith.constant 0 : index
    %6 = vector.load %arg2[%c0, %c0_0] : memref<4x128xf32, #tpu.memory_space<vmem>>, vector<4x128xf32>
    %c0_1 = arith.constant 0 : index
    %c0_2 = arith.constant 0 : index
    %7 = vector.load %arg3[%c0_1, %c0_2] : memref<128x128xf32, #tpu.memory_space<vmem>>, vector<128x128xf32>
    %c0_3 = arith.constant 0 : index
    %c0_4 = arith.constant 0 : index
    %8 = vector.load %arg4[%c0_3, %c0_4] : memref<1x128xf32, #tpu.memory_space<vmem>>, vector<1x128xf32>
    %c0_5 = arith.constant 0 : index
    %c0_6 = arith.constant 0 : index
    %c0_7 = arith.constant 0 : index
    %9 = vector.load %arg1[%c0_5, %c0_6, %c0_7] : memref<8x8x4xf32, #tpu.memory_space<vmem>>, vector<8x8x4xf32>
    %10 = vector.shape_cast %9 : vector<8x8x4xf32> to vector<64x4xf32>
    %cst = arith.constant dense<0.000000e+00> : vector<64x128xf32>
    %11 = tpu.matmul %10, %6, %cst {dimension_numbers = #tpu.dot_dimension_numbers<[1], [0], [0], [1], [0, 0, 1, 1], [], []>} : vector<64x4xf32>, vector<4x128xf32>, vector<64x128xf32> -> vector<64x128xf32>
    %12 = vector.broadcast %8 : vector<1x128xf32> to vector<64x128xf32>
    %13 = arith.addf %11, %12 : vector<64x128xf32>
    %14 = vector.shape_cast %13 : vector<64x128xf32> to vector<8x8x128xf32>
    %c0_8 = arith.constant 0 : index
    %c0_9 = arith.constant 0 : index
    %c0_10 = arith.constant 0 : index
    %15 = vector.load %arg12[%c0_8, %c0_9, %c0_10] : memref<8x8x128xf32, #tpu.memory_space<vmem>>, vector<8x8x128xf32>
    tpu.vector_store %arg12[%c0_8, %c0_9, %c0_10], %14 {strides = array<i32>} : memref<8x8x128xf32, #tpu.memory_space<vmem>>, vector<8x8x128xf32>,
    %cst_11 = arith.constant 0.000000e+00 : f32
    %16 = vector.broadcast %cst_11 : f32 to vector<8x128xf32>
    %cst_12 = arith.constant 0.000000e+00 : f32
    %17 = vector.broadcast %cst_12 : f32 to vector<8x128xf32>
    %c0_13 = arith.constant 0 : index
    %c0_14 = arith.constant 0 : index
    %c0_15 = arith.constant 0 : index
    %18 = vector.load %arg12[%c0_13, %c0_14, %c0_15] : memref<8x8x128xf32, #tpu.memory_space<vmem>>, vector<1x8x128xf32>
    %19 = vector.shape_cast %18 : vector<1x8x128xf32> to vector<8x128xf32>
    %cst_16 = arith.constant dense<0.000000e+00> : vector<8x128xf32>
    %20 = tpu.matmul %16, %7, %cst_16 {dimension_numbers = #tpu.dot_dimension_numbers<[1], [0], [0], [1], [0, 0, 1, 1], [], []>} : vector<8x128xf32>, vector<128x128xf32>, vector<8x128xf32> -> vector<8x128xf32>
    %21 = arith.addf %19, %20 : vector<8x128xf32>
    %cst_17 = arith.constant 5.000000e-01 : f32
    %22 = vector.broadcast %cst_17 : f32 to vector<8x128xf32>
    %23 = arith.mulf %22, %21 : vector<8x128xf32>
    %24 = arith.select %5, %21, %23 : vector<8x128xi1>, vector<8x128xf32>
    %25 = math.tanh %24 : vector<8x128xf32>
    %cst_18 = arith.constant 5.000000e-01 : f32
    %26 = vector.broadcast %cst_18 : f32 to vector<8x128xf32>
    %27 = arith.mulf %26, %25 : vector<8x128xf32>
    %cst_19 = arith.constant 5.000000e-01 : f32
    %28 = vector.broadcast %cst_19 : f32 to vector<8x128xf32>
    %29 = arith.addf %27, %28 : vector<8x128xf32>
    %30 = arith.select %5, %25, %29 : vector<8x128xi1>, vector<8x128xf32>
    %c64_i32_20 = arith.constant 64 : i32
    %31 = tpu.dynamic_rotate %30 by %c64_i32_20 dim 1 : vector<8x128xf32>, i32 -> vector<8x128xf32>
    %32 = arith.mulf %30, %31 : vector<8x128xf32>
    %33 = arith.mulf %30, %17 : vector<8x128xf32>
    %c96_i32_21 = arith.constant 96 : i32
    %34 = tpu.dynamic_rotate %33 by %c96_i32_21 dim 1 : vector<8x128xf32>, i32 -> vector<8x128xf32>
    %35 = arith.addf %32, %34 : vector<8x128xf32>
    %36 = math.tanh %35 : vector<8x128xf32>
    %c96_i32_22 = arith.constant 96 : i32
    %37 = tpu.dynamic_rotate %36 by %c96_i32_22 dim 1 : vector<8x128xf32>, i32 -> vector<8x128xf32>
    %38 = arith.mulf %30, %37 : vector<8x128xf32>
    %c32_i32 = arith.constant 32 : i32
    %39 = tpu.dynamic_rotate %35 by %c32_i32 dim 1 : vector<8x128xf32>, i32 -> vector<8x128xf32>
    %c0_23 = arith.constant 0 : index
    %c0_24 = arith.constant 0 : index
    %c0_25 = arith.constant 0 : index
    %40 = vector.load %arg11[%c0_23, %c0_24, %c0_25] : memref<8x8x128xf32, #tpu.memory_space<vmem>>, vector<1x8x128xf32>
    %41 = vector.shape_cast %40 : vector<1x8x128xf32> to vector<8x128xf32>
    %42 = vector.shape_cast %38 : vector<8x128xf32> to vector<1x8x128xf32>
    tpu.vector_store %arg11[%c0_23, %c0_24, %c0_25], %42 {strides = array<i32>} : memref<8x8x128xf32, #tpu.memory_space<vmem>>, vector<1x8x128xf32>,
    %c1 = arith.constant 1 : index
    %c0_26 = arith.constant 0 : index
    %c0_27 = arith.constant 0 : index
    %43 = vector.load %arg12[%c1, %c0_26, %c0_27] : memref<8x8x128xf32, #tpu.memory_space<vmem>>, vector<1x8x128xf32>
    %44 = vector.shape_cast %43 : vector<1x8x128xf32> to vector<8x128xf32>
    %cst_28 = arith.constant dense<0.000000e+00> : vector<8x128xf32>
    %45 = tpu.matmul %38, %7, %cst_28 {dimension_numbers = #tpu.dot_dimension_numbers<[1], [0], [0], [1], [0, 0, 1, 1], [], []>} : vector<8x128xf32>, vector<128x128xf32>, vector<8x128xf32> -> vector<8x128xf32>
    %46 = arith.addf %44, %45 : vector<8x128xf32>
    %cst_29 = arith.constant 5.000000e-01 : f32
    %47 = vector.broadcast %cst_29 : f32 to vector<8x128xf32>
    %48 = arith.mulf %47, %46 : vector<8x128xf32>
    %49 = arith.select %5, %46, %48 : vector<8x128xi1>, vector<8x128xf32>
    %50 = math.tanh %49 : vector<8x128xf32>
    %cst_30 = arith.constant 5.000000e-01 : f32
    %51 = vector.broadcast %cst_30 : f32 to vector<8x128xf32>
    %52 = arith.mulf %51, %50 : vector<8x128xf32>
    %cst_31 = arith.constant 5.000000e-01 : f32
    %53 = vector.broadcast %cst_31 : f32 to vector<8x128xf32>
    %54 = arith.addf %52, %53 : vector<8x128xf32>
    %55 = arith.select %5, %50, %54 : vector<8x128xi1>, vector<8x128xf32>
    %c64_i32_32 = arith.constant 64 : i32
    %56 = tpu.dynamic_rotate %55 by %c64_i32_32 dim 1 : vector<8x128xf32>, i32 -> vector<8x128xf32>
    %57 = arith.mulf %55, %56 : vector<8x128xf32>
    %58 = arith.mulf %55, %39 : vector<8x128xf32>
    %c96_i32_33 = arith.constant 96 : i32
    %59 = tpu.dynamic_rotate %58 by %c96_i32_33 dim 1 : vector<8x128xf32>, i32 -> vector<8x128xf32>
    %60 = arith.addf %57, %59 : vector<8x128xf32>
    %61 = math.tanh %60 : vector<8x128xf32>
    %c96_i32_34 = arith.constant 96 : i32
    %62 = tpu.dynamic_rotate %61 by %c96_i32_34 dim 1 : vector<8x128xf32>, i32 -> vector<8x128xf32>
    %63 = arith.mulf %55, %62 : vector<8x128xf32>
    %c32_i32_35 = arith.constant 32 : i32
    %64 = tpu.dynamic_rotate %60 by %c32_i32_35 dim 1 : vector<8x128xf32>, i32 -> vector<8x128xf32>
    %c1_36 = arith.constant 1 : index
    %c0_37 = arith.constant 0 : index
    %c0_38 = arith.constant 0 : index
    %65 = vector.load %arg11[%c1_36, %c0_37, %c0_38] : memref<8x8x128xf32, #tpu.memory_space<vmem>>, vector<1x8x128xf32>
    %66 = vector.shape_cast %65 : vector<1x8x128xf32> to vector<8x128xf32>
    %67 = vector.shape_cast %63 : vector<8x128xf32> to vector<1x8x128xf32>
    tpu.vector_store %arg11[%c1_36, %c0_37, %c0_38], %67 {strides = array<i32>} : memref<8x8x128xf32, #tpu.memory_space<vmem>>, vector<1x8x128xf32>,
    %c2 = arith.constant 2 : index
    %c0_39 = arith.constant 0 : index
    %c0_40 = arith.constant 0 : index
    %68 = vector.load %arg12[%c2, %c0_39, %c0_40] : memref<8x8x128xf32, #tpu.memory_space<vmem>>, vector<1x8x128xf32>
    %69 = vector.shape_cast %68 : vector<1x8x128xf32> to vector<8x128xf32>
    %cst_41 = arith.constant dense<0.000000e+00> : vector<8x128xf32>
    %70 = tpu.matmul %63, %7, %cst_41 {dimension_numbers = #tpu.dot_dimension_numbers<[1], [0], [0], [1], [0, 0, 1, 1], [], []>} : vector<8x128xf32>, vector<128x128xf32>, vector<8x128xf32> -> vector<8x128xf32>
    %71 = arith.addf %69, %70 : vector<8x128xf32>
    %cst_42 = arith.constant 5.000000e-01 : f32
    %72 = vector.broadcast %cst_42 : f32 to vector<8x128xf32>
    %73 = arith.mulf %72, %71 : vector<8x128xf32>
    %74 = arith.select %5, %71, %73 : vector<8x128xi1>, vector<8x128xf32>
    %75 = math.tanh %74 : vector<8x128xf32>
    %cst_43 = arith.constant 5.000000e-01 : f32
    %76 = vector.broadcast %cst_43 : f32 to vector<8x128xf32>
    %77 = arith.mulf %76, %75 : vector<8x128xf32>
    %cst_44 = arith.constant 5.000000e-01 : f32
    %78 = vector.broadcast %cst_44 : f32 to vector<8x128xf32>
    %79 = arith.addf %77, %78 : vector<8x128xf32>
    %80 = arith.select %5, %75, %79 : vector<8x128xi1>, vector<8x128xf32>
    %c64_i32_45 = arith.constant 64 : i32
    %81 = tpu.dynamic_rotate %80 by %c64_i32_45 dim 1 : vector<8x128xf32>, i32 -> vector<8x128xf32>
    %82 = arith.mulf %80, %81 : vector<8x128xf32>
    %83 = arith.mulf %80, %64 : vector<8x128xf32>
    %c96_i32_46 = arith.constant 96 : i32
    %84 = tpu.dynamic_rotate %83 by %c96_i32_46 dim 1 : vector<8x128xf32>, i32 -> vector<8x128xf32>
    %85 = arith.addf %82, %84 : vector<8x128xf32>
    %86 = math.tanh %85 : vector<8x128xf32>
    %c96_i32_47 = arith.constant 96 : i32
    %87 = tpu.dynamic_rotate %86 by %c96_i32_47 dim 1 : vector<8x128xf32>, i32 -> vector<8x128xf32>
    %88 = arith.mulf %80, %87 : vector<8x128xf32>
    %c32_i32_48 = arith.constant 32 : i32
    %89 = tpu.dynamic_rotate %85 by %c32_i32_48 dim 1 : vector<8x128xf32>, i32 -> vector<8x128xf32>
    %c2_49 = arith.constant 2 : index
    %c0_50 = arith.constant 0 : index
    %c0_51 = arith.constant 0 : index
    %90 = vector.load %arg11[%c2_49, %c0_50, %c0_51] : memref<8x8x128xf32, #tpu.memory_space<vmem>>, vector<1x8x128xf32>
    %91 = vector.shape_cast %90 : vector<1x8x128xf32> to vector<8x128xf32>
    %92 = vector.shape_cast %88 : vector<8x128xf32> to vector<1x8x128xf32>
    tpu.vector_store %arg11[%c2_49, %c0_50, %c0_51], %92 {strides = array<i32>} : memref<8x8x128xf32, #tpu.memory_space<vmem>>, vector<1x8x128xf32>,
    %c3 = arith.constant 3 : index
    %c0_52 = arith.constant 0 : index
    %c0_53 = arith.constant 0 : index
    %93 = vector.load %arg12[%c3, %c0_52, %c0_53] : memref<8x8x128xf32, #tpu.memory_space<vmem>>, vector<1x8x128xf32>
    %94 = vector.shape_cast %93 : vector<1x8x128xf32> to vector<8x128xf32>
    %cst_54 = arith.constant dense<0.000000e+00> : vector<8x128xf32>
    %95 = tpu.matmul %88, %7, %cst_54 {dimension_numbers = #tpu.dot_dimension_numbers<[1], [0], [0], [1], [0, 0, 1, 1], [], []>} : vector<8x128xf32>, vector<128x128xf32>, vector<8x128xf32> -> vector<8x128xf32>
    %96 = arith.addf %94, %95 : vector<8x128xf32>
    %cst_55 = arith.constant 5.000000e-01 : f32
    %97 = vector.broadcast %cst_55 : f32 to vector<8x128xf32>
    %98 = arith.mulf %97, %96 : vector<8x128xf32>
    %99 = arith.select %5, %96, %98 : vector<8x128xi1>, vector<8x128xf32>
    %100 = math.tanh %99 : vector<8x128xf32>
    %cst_56 = arith.constant 5.000000e-01 : f32
    %101 = vector.broadcast %cst_56 : f32 to vector<8x128xf32>
    %102 = arith.mulf %101, %100 : vector<8x128xf32>
    %cst_57 = arith.constant 5.000000e-01 : f32
    %103 = vector.broadcast %cst_57 : f32 to vector<8x128xf32>
    %104 = arith.addf %102, %103 : vector<8x128xf32>
    %105 = arith.select %5, %100, %104 : vector<8x128xi1>, vector<8x128xf32>
    %c64_i32_58 = arith.constant 64 : i32
    %106 = tpu.dynamic_rotate %105 by %c64_i32_58 dim 1 : vector<8x128xf32>, i32 -> vector<8x128xf32>
    %107 = arith.mulf %105, %106 : vector<8x128xf32>
    %108 = arith.mulf %105, %89 : vector<8x128xf32>
    %c96_i32_59 = arith.constant 96 : i32
    %109 = tpu.dynamic_rotate %108 by %c96_i32_59 dim 1 : vector<8x128xf32>, i32 -> vector<8x128xf32>
    %110 = arith.addf %107, %109 : vector<8x128xf32>
    %111 = math.tanh %110 : vector<8x128xf32>
    %c96_i32_60 = arith.constant 96 : i32
    %112 = tpu.dynamic_rotate %111 by %c96_i32_60 dim 1 : vector<8x128xf32>, i32 -> vector<8x128xf32>
    %113 = arith.mulf %105, %112 : vector<8x128xf32>
    %c32_i32_61 = arith.constant 32 : i32
    %114 = tpu.dynamic_rotate %110 by %c32_i32_61 dim 1 : vector<8x128xf32>, i32 -> vector<8x128xf32>
    %c3_62 = arith.constant 3 : index
    %c0_63 = arith.constant 0 : index
    %c0_64 = arith.constant 0 : index
    %115 = vector.load %arg11[%c3_62, %c0_63, %c0_64] : memref<8x8x128xf32, #tpu.memory_space<vmem>>, vector<1x8x128xf32>
    %116 = vector.shape_cast %115 : vector<1x8x128xf32> to vector<8x128xf32>
    %117 = vector.shape_cast %113 : vector<8x128xf32> to vector<1x8x128xf32>
    tpu.vector_store %arg11[%c3_62, %c0_63, %c0_64], %117 {strides = array<i32>} : memref<8x8x128xf32, #tpu.memory_space<vmem>>, vector<1x8x128xf32>,
    %c4 = arith.constant 4 : index
    %c0_65 = arith.constant 0 : index
    %c0_66 = arith.constant 0 : index
    %118 = vector.load %arg12[%c4, %c0_65, %c0_66] : memref<8x8x128xf32, #tpu.memory_space<vmem>>, vector<1x8x128xf32>
    %119 = vector.shape_cast %118 : vector<1x8x128xf32> to vector<8x128xf32>
    %cst_67 = arith.constant dense<0.000000e+00> : vector<8x128xf32>
    %120 = tpu.matmul %113, %7, %cst_67 {dimension_numbers = #tpu.dot_dimension_numbers<[1], [0], [0], [1], [0, 0, 1, 1], [], []>} : vector<8x128xf32>, vector<128x128xf32>, vector<8x128xf32> -> vector<8x128xf32>
    %121 = arith.addf %119, %120 : vector<8x128xf32>
    %cst_68 = arith.constant 5.000000e-01 : f32
    %122 = vector.broadcast %cst_68 : f32 to vector<8x128xf32>
    %123 = arith.mulf %122, %121 : vector<8x128xf32>
    %124 = arith.select %5, %121, %123 : vector<8x128xi1>, vector<8x128xf32>
    %125 = math.tanh %124 : vector<8x128xf32>
    %cst_69 = arith.constant 5.000000e-01 : f32
    %126 = vector.broadcast %cst_69 : f32 to vector<8x128xf32>
    %127 = arith.mulf %126, %125 : vector<8x128xf32>
    %cst_70 = arith.constant 5.000000e-01 : f32
    %128 = vector.broadcast %cst_70 : f32 to vector<8x128xf32>
    %129 = arith.addf %127, %128 : vector<8x128xf32>
    %130 = arith.select %5, %125, %129 : vector<8x128xi1>, vector<8x128xf32>
    %c64_i32_71 = arith.constant 64 : i32
    %131 = tpu.dynamic_rotate %130 by %c64_i32_71 dim 1 : vector<8x128xf32>, i32 -> vector<8x128xf32>
    %132 = arith.mulf %130, %131 : vector<8x128xf32>
    %133 = arith.mulf %130, %114 : vector<8x128xf32>
    %c96_i32_72 = arith.constant 96 : i32
    %134 = tpu.dynamic_rotate %133 by %c96_i32_72 dim 1 : vector<8x128xf32>, i32 -> vector<8x128xf32>
    %135 = arith.addf %132, %134 : vector<8x128xf32>
    %136 = math.tanh %135 : vector<8x128xf32>
    %c96_i32_73 = arith.constant 96 : i32
    %137 = tpu.dynamic_rotate %136 by %c96_i32_73 dim 1 : vector<8x128xf32>, i32 -> vector<8x128xf32>
    %138 = arith.mulf %130, %137 : vector<8x128xf32>
    %c32_i32_74 = arith.constant 32 : i32
    %139 = tpu.dynamic_rotate %135 by %c32_i32_74 dim 1 : vector<8x128xf32>, i32 -> vector<8x128xf32>
    %c4_75 = arith.constant 4 : index
    %c0_76 = arith.constant 0 : index
    %c0_77 = arith.constant 0 : index
    %140 = vector.load %arg11[%c4_75, %c0_76, %c0_77] : memref<8x8x128xf32, #tpu.memory_space<vmem>>, vector<1x8x128xf32>
    %141 = vector.shape_cast %140 : vector<1x8x128xf32> to vector<8x128xf32>
    %142 = vector.shape_cast %138 : vector<8x128xf32> to vector<1x8x128xf32>
    tpu.vector_store %arg11[%c4_75, %c0_76, %c0_77], %142 {strides = array<i32>} : memref<8x8x128xf32, #tpu.memory_space<vmem>>, vector<1x8x128xf32>,
    %c5 = arith.constant 5 : index
    %c0_78 = arith.constant 0 : index
    %c0_79 = arith.constant 0 : index
    %143 = vector.load %arg12[%c5, %c0_78, %c0_79] : memref<8x8x128xf32, #tpu.memory_space<vmem>>, vector<1x8x128xf32>
    %144 = vector.shape_cast %143 : vector<1x8x128xf32> to vector<8x128xf32>
    %cst_80 = arith.constant dense<0.000000e+00> : vector<8x128xf32>
    %145 = tpu.matmul %138, %7, %cst_80 {dimension_numbers = #tpu.dot_dimension_numbers<[1], [0], [0], [1], [0, 0, 1, 1], [], []>} : vector<8x128xf32>, vector<128x128xf32>, vector<8x128xf32> -> vector<8x128xf32>
    %146 = arith.addf %144, %145 : vector<8x128xf32>
    %cst_81 = arith.constant 5.000000e-01 : f32
    %147 = vector.broadcast %cst_81 : f32 to vector<8x128xf32>
    %148 = arith.mulf %147, %146 : vector<8x128xf32>
    %149 = arith.select %5, %146, %148 : vector<8x128xi1>, vector<8x128xf32>
    %150 = math.tanh %149 : vector<8x128xf32>
    %cst_82 = arith.constant 5.000000e-01 : f32
    %151 = vector.broadcast %cst_82 : f32 to vector<8x128xf32>
    %152 = arith.mulf %151, %150 : vector<8x128xf32>
    %cst_83 = arith.constant 5.000000e-01 : f32
    %153 = vector.broadcast %cst_83 : f32 to vector<8x128xf32>
    %154 = arith.addf %152, %153 : vector<8x128xf32>
    %155 = arith.select %5, %150, %154 : vector<8x128xi1>, vector<8x128xf32>
    %c64_i32_84 = arith.constant 64 : i32
    %156 = tpu.dynamic_rotate %155 by %c64_i32_84 dim 1 : vector<8x128xf32>, i32 -> vector<8x128xf32>
    %157 = arith.mulf %155, %156 : vector<8x128xf32>
    %158 = arith.mulf %155, %139 : vector<8x128xf32>
    %c96_i32_85 = arith.constant 96 : i32
    %159 = tpu.dynamic_rotate %158 by %c96_i32_85 dim 1 : vector<8x128xf32>, i32 -> vector<8x128xf32>
    %160 = arith.addf %157, %159 : vector<8x128xf32>
    %161 = math.tanh %160 : vector<8x128xf32>
    %c96_i32_86 = arith.constant 96 : i32
    %162 = tpu.dynamic_rotate %161 by %c96_i32_86 dim 1 : vector<8x128xf32>, i32 -> vector<8x128xf32>
    %163 = arith.mulf %155, %162 : vector<8x128xf32>
    %c32_i32_87 = arith.constant 32 : i32
    %164 = tpu.dynamic_rotate %160 by %c32_i32_87 dim 1 : vector<8x128xf32>, i32 -> vector<8x128xf32>
    %c5_88 = arith.constant 5 : index
    %c0_89 = arith.constant 0 : index
    %c0_90 = arith.constant 0 : index
    %165 = vector.load %arg11[%c5_88, %c0_89, %c0_90] : memref<8x8x128xf32, #tpu.memory_space<vmem>>, vector<1x8x128xf32>
    %166 = vector.shape_cast %165 : vector<1x8x128xf32> to vector<8x128xf32>
    %167 = vector.shape_cast %163 : vector<8x128xf32> to vector<1x8x128xf32>
    tpu.vector_store %arg11[%c5_88, %c0_89, %c0_90], %167 {strides = array<i32>} : memref<8x8x128xf32, #tpu.memory_space<vmem>>, vector<1x8x128xf32>,
    %c6 = arith.constant 6 : index
    %c0_91 = arith.constant 0 : index
    %c0_92 = arith.constant 0 : index
    %168 = vector.load %arg12[%c6, %c0_91, %c0_92] : memref<8x8x128xf32, #tpu.memory_space<vmem>>, vector<1x8x128xf32>
    %169 = vector.shape_cast %168 : vector<1x8x128xf32> to vector<8x128xf32>
    %cst_93 = arith.constant dense<0.000000e+00> : vector<8x128xf32>
    %170 = tpu.matmul %163, %7, %cst_93 {dimension_numbers = #tpu.dot_dimension_numbers<[1], [0], [0], [1], [0, 0, 1, 1], [], []>} : vector<8x128xf32>, vector<128x128xf32>, vector<8x128xf32> -> vector<8x128xf32>
    %171 = arith.addf %169, %170 : vector<8x128xf32>
    %cst_94 = arith.constant 5.000000e-01 : f32
    %172 = vector.broadcast %cst_94 : f32 to vector<8x128xf32>
    %173 = arith.mulf %172, %171 : vector<8x128xf32>
    %174 = arith.select %5, %171, %173 : vector<8x128xi1>, vector<8x128xf32>
    %175 = math.tanh %174 : vector<8x128xf32>
    %cst_95 = arith.constant 5.000000e-01 : f32
    %176 = vector.broadcast %cst_95 : f32 to vector<8x128xf32>
    %177 = arith.mulf %176, %175 : vector<8x128xf32>
    %cst_96 = arith.constant 5.000000e-01 : f32
    %178 = vector.broadcast %cst_96 : f32 to vector<8x128xf32>
    %179 = arith.addf %177, %178 : vector<8x128xf32>
    %180 = arith.select %5, %175, %179 : vector<8x128xi1>, vector<8x128xf32>
    %c64_i32_97 = arith.constant 64 : i32
    %181 = tpu.dynamic_rotate %180 by %c64_i32_97 dim 1 : vector<8x128xf32>, i32 -> vector<8x128xf32>
    %182 = arith.mulf %180, %181 : vector<8x128xf32>
    %183 = arith.mulf %180, %164 : vector<8x128xf32>
    %c96_i32_98 = arith.constant 96 : i32
    %184 = tpu.dynamic_rotate %183 by %c96_i32_98 dim 1 : vector<8x128xf32>, i32 -> vector<8x128xf32>
    %185 = arith.addf %182, %184 : vector<8x128xf32>
    %186 = math.tanh %185 : vector<8x128xf32>
    %c96_i32_99 = arith.constant 96 : i32
    %187 = tpu.dynamic_rotate %186 by %c96_i32_99 dim 1 : vector<8x128xf32>, i32 -> vector<8x128xf32>
    %188 = arith.mulf %180, %187 : vector<8x128xf32>
    %c32_i32_100 = arith.constant 32 : i32
    %189 = tpu.dynamic_rotate %185 by %c32_i32_100 dim 1 : vector<8x128xf32>, i32 -> vector<8x128xf32>
    %c6_101 = arith.constant 6 : index
    %c0_102 = arith.constant 0 : index
    %c0_103 = arith.constant 0 : index
    %190 = vector.load %arg11[%c6_101, %c0_102, %c0_103] : memref<8x8x128xf32, #tpu.memory_space<vmem>>, vector<1x8x128xf32>
    %191 = vector.shape_cast %190 : vector<1x8x128xf32> to vector<8x128xf32>
    %192 = vector.shape_cast %188 : vector<8x128xf32> to vector<1x8x128xf32>
    tpu.vector_store %arg11[%c6_101, %c0_102, %c0_103], %192 {strides = array<i32>} : memref<8x8x128xf32, #tpu.memory_space<vmem>>, vector<1x8x128xf32>,
    %c7 = arith.constant 7 : index
    %c0_104 = arith.constant 0 : index
    %c0_105 = arith.constant 0 : index
    %193 = vector.load %arg12[%c7, %c0_104, %c0_105] : memref<8x8x128xf32, #tpu.memory_space<vmem>>, vector<1x8x128xf32>
    %194 = vector.shape_cast %193 : vector<1x8x128xf32> to vector<8x128xf32>
    %cst_106 = arith.constant dense<0.000000e+00> : vector<8x128xf32>
    %195 = tpu.matmul %188, %7, %cst_106 {dimension_numbers = #tpu.dot_dimension_numbers<[1], [0], [0], [1], [0, 0, 1, 1], [], []>} : vector<8x128xf32>, vector<128x128xf32>, vector<8x128xf32> -> vector<8x128xf32>
    %196 = arith.addf %194, %195 : vector<8x128xf32>
    %cst_107 = arith.constant 5.000000e-01 : f32
    %197 = vector.broadcast %cst_107 : f32 to vector<8x128xf32>
    %198 = arith.mulf %197, %196 : vector<8x128xf32>
    %199 = arith.select %5, %196, %198 : vector<8x128xi1>, vector<8x128xf32>
    %200 = math.tanh %199 : vector<8x128xf32>
    %cst_108 = arith.constant 5.000000e-01 : f32
    %201 = vector.broadcast %cst_108 : f32 to vector<8x128xf32>
    %202 = arith.mulf %201, %200 : vector<8x128xf32>
    %cst_109 = arith.constant 5.000000e-01 : f32
    %203 = vector.broadcast %cst_109 : f32 to vector<8x128xf32>
    %204 = arith.addf %202, %203 : vector<8x128xf32>
    %205 = arith.select %5, %200, %204 : vector<8x128xi1>, vector<8x128xf32>
    %c64_i32_110 = arith.constant 64 : i32
    %206 = tpu.dynamic_rotate %205 by %c64_i32_110 dim 1 : vector<8x128xf32>, i32 -> vector<8x128xf32>
    %207 = arith.mulf %205, %206 : vector<8x128xf32>
    %208 = arith.mulf %205, %189 : vector<8x128xf32>
    %c96_i32_111 = arith.constant 96 : i32
    %209 = tpu.dynamic_rotate %208 by %c96_i32_111 dim 1 : vector<8x128xf32>, i32 -> vector<8x128xf32>
    %210 = arith.addf %207, %209 : vector<8x128xf32>
    %211 = math.tanh %210 : vector<8x128xf32>
    %c96_i32_112 = arith.constant 96 : i32
    %212 = tpu.dynamic_rotate %211 by %c96_i32_112 dim 1 : vector<8x128xf32>, i32 -> vector<8x128xf32>
    %213 = arith.mulf %205, %212 : vector<8x128xf32>
    %c7_113 = arith.constant 7 : index
    %c0_114 = arith.constant 0 : index
    %c0_115 = arith.constant 0 : index
    %214 = vector.load %arg11[%c7_113, %c0_114, %c0_115] : memref<8x8x128xf32, #tpu.memory_space<vmem>>, vector<1x8x128xf32>
    %215 = vector.shape_cast %214 : vector<1x8x128xf32> to vector<8x128xf32>
    %216 = vector.shape_cast %213 : vector<8x128xf32> to vector<1x8x128xf32>
    tpu.vector_store %arg11[%c7_113, %c0_114, %c0_115], %216 {strides = array<i32>} : memref<8x8x128xf32, #tpu.memory_space<vmem>>, vector<1x8x128xf32>,
    %c0_116 = arith.constant 0 : index
    %c0_117 = arith.constant 0 : index
    %217 = vector.load %arg5[%c0_116, %c0_117] : memref<128x128xf32, #tpu.memory_space<vmem>>, vector<128x128xf32>
    %c0_118 = arith.constant 0 : index
    %c0_119 = arith.constant 0 : index
    %218 = vector.load %arg6[%c0_118, %c0_119] : memref<128x128xf32, #tpu.memory_space<vmem>>, vector<128x128xf32>
    %c0_120 = arith.constant 0 : index
    %c0_121 = arith.constant 0 : index
    %219 = vector.load %arg7[%c0_120, %c0_121] : memref<1x128xf32, #tpu.memory_space<vmem>>, vector<1x128xf32>
    %c0_122 = arith.constant 0 : index
    %c0_123 = arith.constant 0 : index
    %c0_124 = arith.constant 0 : index
    %220 = vector.load %arg11[%c0_122, %c0_123, %c0_124] : memref<8x8x128xf32, #tpu.memory_space<vmem>>, vector<8x8x128xf32>
    %221 = vector.shape_cast %220 : vector<8x8x128xf32> to vector<64x128xf32>
    %cst_125 = arith.constant dense<0.000000e+00> : vector<64x128xf32>
    %222 = tpu.matmul %221, %217, %cst_125 {dimension_numbers = #tpu.dot_dimension_numbers<[1], [0], [0], [1], [0, 0, 1, 1], [], []>} : vector<64x128xf32>, vector<128x128xf32>, vector<64x128xf32> -> vector<64x128xf32>
    %223 = vector.broadcast %219 : vector<1x128xf32> to vector<64x128xf32>
    %224 = arith.addf %222, %223 : vector<64x128xf32>
    %225 = vector.shape_cast %224 : vector<64x128xf32> to vector<8x8x128xf32>
    %c0_126 = arith.constant 0 : index
    %c0_127 = arith.constant 0 : index
    %c0_128 = arith.constant 0 : index
    %226 = vector.load %arg12[%c0_126, %c0_127, %c0_128] : memref<8x8x128xf32, #tpu.memory_space<vmem>>, vector<8x8x128xf32>
    tpu.vector_store %arg12[%c0_126, %c0_127, %c0_128], %225 {strides = array<i32>} : memref<8x8x128xf32, #tpu.memory_space<vmem>>, vector<8x8x128xf32>,
    %cst_129 = arith.constant 0.000000e+00 : f32
    %227 = vector.broadcast %cst_129 : f32 to vector<8x128xf32>
    %cst_130 = arith.constant 0.000000e+00 : f32
    %228 = vector.broadcast %cst_130 : f32 to vector<8x128xf32>
    %c0_131 = arith.constant 0 : index
    %c0_132 = arith.constant 0 : index
    %c0_133 = arith.constant 0 : index
    %229 = vector.load %arg12[%c0_131, %c0_132, %c0_133] : memref<8x8x128xf32, #tpu.memory_space<vmem>>, vector<1x8x128xf32>
    %230 = vector.shape_cast %229 : vector<1x8x128xf32> to vector<8x128xf32>
    %cst_134 = arith.constant dense<0.000000e+00> : vector<8x128xf32>
    %231 = tpu.matmul %227, %218, %cst_134 {dimension_numbers = #tpu.dot_dimension_numbers<[1], [0], [0], [1], [0, 0, 1, 1], [], []>} : vector<8x128xf32>, vector<128x128xf32>, vector<8x128xf32> -> vector<8x128xf32>
    %232 = arith.addf %230, %231 : vector<8x128xf32>
    %cst_135 = arith.constant 5.000000e-01 : f32
    %233 = vector.broadcast %cst_135 : f32 to vector<8x128xf32>
    %234 = arith.mulf %233, %232 : vector<8x128xf32>
    %235 = arith.select %5, %232, %234 : vector<8x128xi1>, vector<8x128xf32>
    %236 = math.tanh %235 : vector<8x128xf32>
    %cst_136 = arith.constant 5.000000e-01 : f32
    %237 = vector.broadcast %cst_136 : f32 to vector<8x128xf32>
    %238 = arith.mulf %237, %236 : vector<8x128xf32>
    %cst_137 = arith.constant 5.000000e-01 : f32
    %239 = vector.broadcast %cst_137 : f32 to vector<8x128xf32>
    %240 = arith.addf %238, %239 : vector<8x128xf32>
    %241 = arith.select %5, %236, %240 : vector<8x128xi1>, vector<8x128xf32>
    %c64_i32_138 = arith.constant 64 : i32
    %242 = tpu.dynamic_rotate %241 by %c64_i32_138 dim 1 : vector<8x128xf32>, i32 -> vector<8x128xf32>
    %243 = arith.mulf %241, %242 : vector<8x128xf32>
    %244 = arith.mulf %241, %228 : vector<8x128xf32>
    %c96_i32_139 = arith.constant 96 : i32
    %245 = tpu.dynamic_rotate %244 by %c96_i32_139 dim 1 : vector<8x128xf32>, i32 -> vector<8x128xf32>
    %246 = arith.addf %243, %245 : vector<8x128xf32>
    %247 = math.tanh %246 : vector<8x128xf32>
    %c96_i32_140 = arith.constant 96 : i32
    %248 = tpu.dynamic_rotate %247 by %c96_i32_140 dim 1 : vector<8x128xf32>, i32 -> vector<8x128xf32>
    %249 = arith.mulf %241, %248 : vector<8x128xf32>
    %c32_i32_141 = arith.constant 32 : i32
    %250 = tpu.dynamic_rotate %246 by %c32_i32_141 dim 1 : vector<8x128xf32>, i32 -> vector<8x128xf32>
    %c1_142 = arith.constant 1 : index
    %c0_143 = arith.constant 0 : index
    %c0_144 = arith.constant 0 : index
    %251 = vector.load %arg12[%c1_142, %c0_143, %c0_144] : memref<8x8x128xf32, #tpu.memory_space<vmem>>, vector<1x8x128xf32>
    %252 = vector.shape_cast %251 : vector<1x8x128xf32> to vector<8x128xf32>
    %cst_145 = arith.constant dense<0.000000e+00> : vector<8x128xf32>
    %253 = tpu.matmul %249, %218, %cst_145 {dimension_numbers = #tpu.dot_dimension_numbers<[1], [0], [0], [1], [0, 0, 1, 1], [], []>} : vector<8x128xf32>, vector<128x128xf32>, vector<8x128xf32> -> vector<8x128xf32>
    %254 = arith.addf %252, %253 : vector<8x128xf32>
    %cst_146 = arith.constant 5.000000e-01 : f32
    %255 = vector.broadcast %cst_146 : f32 to vector<8x128xf32>
    %256 = arith.mulf %255, %254 : vector<8x128xf32>
    %257 = arith.select %5, %254, %256 : vector<8x128xi1>, vector<8x128xf32>
    %258 = math.tanh %257 : vector<8x128xf32>
    %cst_147 = arith.constant 5.000000e-01 : f32
    %259 = vector.broadcast %cst_147 : f32 to vector<8x128xf32>
    %260 = arith.mulf %259, %258 : vector<8x128xf32>
    %cst_148 = arith.constant 5.000000e-01 : f32
    %261 = vector.broadcast %cst_148 : f32 to vector<8x128xf32>
    %262 = arith.addf %260, %261 : vector<8x128xf32>
    %263 = arith.select %5, %258, %262 : vector<8x128xi1>, vector<8x128xf32>
    %c64_i32_149 = arith.constant 64 : i32
    %264 = tpu.dynamic_rotate %263 by %c64_i32_149 dim 1 : vector<8x128xf32>, i32 -> vector<8x128xf32>
    %265 = arith.mulf %263, %264 : vector<8x128xf32>
    %266 = arith.mulf %263, %250 : vector<8x128xf32>
    %c96_i32_150 = arith.constant 96 : i32
    %267 = tpu.dynamic_rotate %266 by %c96_i32_150 dim 1 : vector<8x128xf32>, i32 -> vector<8x128xf32>
    %268 = arith.addf %265, %267 : vector<8x128xf32>
    %269 = math.tanh %268 : vector<8x128xf32>
    %c96_i32_151 = arith.constant 96 : i32
    %270 = tpu.dynamic_rotate %269 by %c96_i32_151 dim 1 : vector<8x128xf32>, i32 -> vector<8x128xf32>
    %271 = arith.mulf %263, %270 : vector<8x128xf32>
    %c32_i32_152 = arith.constant 32 : i32
    %272 = tpu.dynamic_rotate %268 by %c32_i32_152 dim 1 : vector<8x128xf32>, i32 -> vector<8x128xf32>
    %c2_153 = arith.constant 2 : index
    %c0_154 = arith.constant 0 : index
    %c0_155 = arith.constant 0 : index
    %273 = vector.load %arg12[%c2_153, %c0_154, %c0_155] : memref<8x8x128xf32, #tpu.memory_space<vmem>>, vector<1x8x128xf32>
    %274 = vector.shape_cast %273 : vector<1x8x128xf32> to vector<8x128xf32>
    %cst_156 = arith.constant dense<0.000000e+00> : vector<8x128xf32>
    %275 = tpu.matmul %271, %218, %cst_156 {dimension_numbers = #tpu.dot_dimension_numbers<[1], [0], [0], [1], [0, 0, 1, 1], [], []>} : vector<8x128xf32>, vector<128x128xf32>, vector<8x128xf32> -> vector<8x128xf32>
    %276 = arith.addf %274, %275 : vector<8x128xf32>
    %cst_157 = arith.constant 5.000000e-01 : f32
    %277 = vector.broadcast %cst_157 : f32 to vector<8x128xf32>
    %278 = arith.mulf %277, %276 : vector<8x128xf32>
    %279 = arith.select %5, %276, %278 : vector<8x128xi1>, vector<8x128xf32>
    %280 = math.tanh %279 : vector<8x128xf32>
    %cst_158 = arith.constant 5.000000e-01 : f32
    %281 = vector.broadcast %cst_158 : f32 to vector<8x128xf32>
    %282 = arith.mulf %281, %280 : vector<8x128xf32>
    %cst_159 = arith.constant 5.000000e-01 : f32
    %283 = vector.broadcast %cst_159 : f32 to vector<8x128xf32>
    %284 = arith.addf %282, %283 : vector<8x128xf32>
    %285 = arith.select %5, %280, %284 : vector<8x128xi1>, vector<8x128xf32>
    %c64_i32_160 = arith.constant 64 : i32
    %286 = tpu.dynamic_rotate %285 by %c64_i32_160 dim 1 : vector<8x128xf32>, i32 -> vector<8x128xf32>
    %287 = arith.mulf %285, %286 : vector<8x128xf32>
    %288 = arith.mulf %285, %272 : vector<8x128xf32>
    %c96_i32_161 = arith.constant 96 : i32
    %289 = tpu.dynamic_rotate %288 by %c96_i32_161 dim 1 : vector<8x128xf32>, i32 -> vector<8x128xf32>
    %290 = arith.addf %287, %289 : vector<8x128xf32>
    %291 = math.tanh %290 : vector<8x128xf32>
    %c96_i32_162 = arith.constant 96 : i32
    %292 = tpu.dynamic_rotate %291 by %c96_i32_162 dim 1 : vector<8x128xf32>, i32 -> vector<8x128xf32>
    %293 = arith.mulf %285, %292 : vector<8x128xf32>
    %c32_i32_163 = arith.constant 32 : i32
    %294 = tpu.dynamic_rotate %290 by %c32_i32_163 dim 1 : vector<8x128xf32>, i32 -> vector<8x128xf32>
    %c3_164 = arith.constant 3 : index
    %c0_165 = arith.constant 0 : index
    %c0_166 = arith.constant 0 : index
    %295 = vector.load %arg12[%c3_164, %c0_165, %c0_166] : memref<8x8x128xf32, #tpu.memory_space<vmem>>, vector<1x8x128xf32>
    %296 = vector.shape_cast %295 : vector<1x8x128xf32> to vector<8x128xf32>
    %cst_167 = arith.constant dense<0.000000e+00> : vector<8x128xf32>
    %297 = tpu.matmul %293, %218, %cst_167 {dimension_numbers = #tpu.dot_dimension_numbers<[1], [0], [0], [1], [0, 0, 1, 1], [], []>} : vector<8x128xf32>, vector<128x128xf32>, vector<8x128xf32> -> vector<8x128xf32>
    %298 = arith.addf %296, %297 : vector<8x128xf32>
    %cst_168 = arith.constant 5.000000e-01 : f32
    %299 = vector.broadcast %cst_168 : f32 to vector<8x128xf32>
    %300 = arith.mulf %299, %298 : vector<8x128xf32>
    %301 = arith.select %5, %298, %300 : vector<8x128xi1>, vector<8x128xf32>
    %302 = math.tanh %301 : vector<8x128xf32>
    %cst_169 = arith.constant 5.000000e-01 : f32
    %303 = vector.broadcast %cst_169 : f32 to vector<8x128xf32>
    %304 = arith.mulf %303, %302 : vector<8x128xf32>
    %cst_170 = arith.constant 5.000000e-01 : f32
    %305 = vector.broadcast %cst_170 : f32 to vector<8x128xf32>
    %306 = arith.addf %304, %305 : vector<8x128xf32>
    %307 = arith.select %5, %302, %306 : vector<8x128xi1>, vector<8x128xf32>
    %c64_i32_171 = arith.constant 64 : i32
    %308 = tpu.dynamic_rotate %307 by %c64_i32_171 dim 1 : vector<8x128xf32>, i32 -> vector<8x128xf32>
    %309 = arith.mulf %307, %308 : vector<8x128xf32>
    %310 = arith.mulf %307, %294 : vector<8x128xf32>
    %c96_i32_172 = arith.constant 96 : i32
    %311 = tpu.dynamic_rotate %310 by %c96_i32_172 dim 1 : vector<8x128xf32>, i32 -> vector<8x128xf32>
    %312 = arith.addf %309, %311 : vector<8x128xf32>
    %313 = math.tanh %312 : vector<8x128xf32>
    %c96_i32_173 = arith.constant 96 : i32
    %314 = tpu.dynamic_rotate %313 by %c96_i32_173 dim 1 : vector<8x128xf32>, i32 -> vector<8x128xf32>
    %315 = arith.mulf %307, %314 : vector<8x128xf32>
    %c32_i32_174 = arith.constant 32 : i32
    %316 = tpu.dynamic_rotate %312 by %c32_i32_174 dim 1 : vector<8x128xf32>, i32 -> vector<8x128xf32>
    %c4_175 = arith.constant 4 : index
    %c0_176 = arith.constant 0 : index
    %c0_177 = arith.constant 0 : index
    %317 = vector.load %arg12[%c4_175, %c0_176, %c0_177] : memref<8x8x128xf32, #tpu.memory_space<vmem>>, vector<1x8x128xf32>
    %318 = vector.shape_cast %317 : vector<1x8x128xf32> to vector<8x128xf32>
    %cst_178 = arith.constant dense<0.000000e+00> : vector<8x128xf32>
    %319 = tpu.matmul %315, %218, %cst_178 {dimension_numbers = #tpu.dot_dimension_numbers<[1], [0], [0], [1], [0, 0, 1, 1], [], []>} : vector<8x128xf32>, vector<128x128xf32>, vector<8x128xf32> -> vector<8x128xf32>
    %320 = arith.addf %318, %319 : vector<8x128xf32>
    %cst_179 = arith.constant 5.000000e-01 : f32
    %321 = vector.broadcast %cst_179 : f32 to vector<8x128xf32>
    %322 = arith.mulf %321, %320 : vector<8x128xf32>
    %323 = arith.select %5, %320, %322 : vector<8x128xi1>, vector<8x128xf32>
    %324 = math.tanh %323 : vector<8x128xf32>
    %cst_180 = arith.constant 5.000000e-01 : f32
    %325 = vector.broadcast %cst_180 : f32 to vector<8x128xf32>
    %326 = arith.mulf %325, %324 : vector<8x128xf32>
    %cst_181 = arith.constant 5.000000e-01 : f32
    %327 = vector.broadcast %cst_181 : f32 to vector<8x128xf32>
    %328 = arith.addf %326, %327 : vector<8x128xf32>
    %329 = arith.select %5, %324, %328 : vector<8x128xi1>, vector<8x128xf32>
    %c64_i32_182 = arith.constant 64 : i32
    %330 = tpu.dynamic_rotate %329 by %c64_i32_182 dim 1 : vector<8x128xf32>, i32 -> vector<8x128xf32>
    %331 = arith.mulf %329, %330 : vector<8x128xf32>
    %332 = arith.mulf %329, %316 : vector<8x128xf32>
    %c96_i32_183 = arith.constant 96 : i32
    %333 = tpu.dynamic_rotate %332 by %c96_i32_183 dim 1 : vector<8x128xf32>, i32 -> vector<8x128xf32>
    %334 = arith.addf %331, %333 : vector<8x128xf32>
    %335 = math.tanh %334 : vector<8x128xf32>
    %c96_i32_184 = arith.constant 96 : i32
    %336 = tpu.dynamic_rotate %335 by %c96_i32_184 dim 1 : vector<8x128xf32>, i32 -> vector<8x128xf32>
    %337 = arith.mulf %329, %336 : vector<8x128xf32>
    %c32_i32_185 = arith.constant 32 : i32
    %338 = tpu.dynamic_rotate %334 by %c32_i32_185 dim 1 : vector<8x128xf32>, i32 -> vector<8x128xf32>
    %c5_186 = arith.constant 5 : index
    %c0_187 = arith.constant 0 : index
    %c0_188 = arith.constant 0 : index
    %339 = vector.load %arg12[%c5_186, %c0_187, %c0_188] : memref<8x8x128xf32, #tpu.memory_space<vmem>>, vector<1x8x128xf32>
    %340 = vector.shape_cast %339 : vector<1x8x128xf32> to vector<8x128xf32>
    %cst_189 = arith.constant dense<0.000000e+00> : vector<8x128xf32>
    %341 = tpu.matmul %337, %218, %cst_189 {dimension_numbers = #tpu.dot_dimension_numbers<[1], [0], [0], [1], [0, 0, 1, 1], [], []>} : vector<8x128xf32>, vector<128x128xf32>, vector<8x128xf32> -> vector<8x128xf32>
    %342 = arith.addf %340, %341 : vector<8x128xf32>
    %cst_190 = arith.constant 5.000000e-01 : f32
    %343 = vector.broadcast %cst_190 : f32 to vector<8x128xf32>
    %344 = arith.mulf %343, %342 : vector<8x128xf32>
    %345 = arith.select %5, %342, %344 : vector<8x128xi1>, vector<8x128xf32>
    %346 = math.tanh %345 : vector<8x128xf32>
    %cst_191 = arith.constant 5.000000e-01 : f32
    %347 = vector.broadcast %cst_191 : f32 to vector<8x128xf32>
    %348 = arith.mulf %347, %346 : vector<8x128xf32>
    %cst_192 = arith.constant 5.000000e-01 : f32
    %349 = vector.broadcast %cst_192 : f32 to vector<8x128xf32>
    %350 = arith.addf %348, %349 : vector<8x128xf32>
    %351 = arith.select %5, %346, %350 : vector<8x128xi1>, vector<8x128xf32>
    %c64_i32_193 = arith.constant 64 : i32
    %352 = tpu.dynamic_rotate %351 by %c64_i32_193 dim 1 : vector<8x128xf32>, i32 -> vector<8x128xf32>
    %353 = arith.mulf %351, %352 : vector<8x128xf32>
    %354 = arith.mulf %351, %338 : vector<8x128xf32>
    %c96_i32_194 = arith.constant 96 : i32
    %355 = tpu.dynamic_rotate %354 by %c96_i32_194 dim 1 : vector<8x128xf32>, i32 -> vector<8x128xf32>
    %356 = arith.addf %353, %355 : vector<8x128xf32>
    %357 = math.tanh %356 : vector<8x128xf32>
    %c96_i32_195 = arith.constant 96 : i32
    %358 = tpu.dynamic_rotate %357 by %c96_i32_195 dim 1 : vector<8x128xf32>, i32 -> vector<8x128xf32>
    %359 = arith.mulf %351, %358 : vector<8x128xf32>
    %c32_i32_196 = arith.constant 32 : i32
    %360 = tpu.dynamic_rotate %356 by %c32_i32_196 dim 1 : vector<8x128xf32>, i32 -> vector<8x128xf32>
    %c6_197 = arith.constant 6 : index
    %c0_198 = arith.constant 0 : index
    %c0_199 = arith.constant 0 : index
    %361 = vector.load %arg12[%c6_197, %c0_198, %c0_199] : memref<8x8x128xf32, #tpu.memory_space<vmem>>, vector<1x8x128xf32>
    %362 = vector.shape_cast %361 : vector<1x8x128xf32> to vector<8x128xf32>
    %cst_200 = arith.constant dense<0.000000e+00> : vector<8x128xf32>
    %363 = tpu.matmul %359, %218, %cst_200 {dimension_numbers = #tpu.dot_dimension_numbers<[1], [0], [0], [1], [0, 0, 1, 1], [], []>} : vector<8x128xf32>, vector<128x128xf32>, vector<8x128xf32> -> vector<8x128xf32>
    %364 = arith.addf %362, %363 : vector<8x128xf32>
    %cst_201 = arith.constant 5.000000e-01 : f32
    %365 = vector.broadcast %cst_201 : f32 to vector<8x128xf32>
    %366 = arith.mulf %365, %364 : vector<8x128xf32>
    %367 = arith.select %5, %364, %366 : vector<8x128xi1>, vector<8x128xf32>
    %368 = math.tanh %367 : vector<8x128xf32>
    %cst_202 = arith.constant 5.000000e-01 : f32
    %369 = vector.broadcast %cst_202 : f32 to vector<8x128xf32>
    %370 = arith.mulf %369, %368 : vector<8x128xf32>
    %cst_203 = arith.constant 5.000000e-01 : f32
    %371 = vector.broadcast %cst_203 : f32 to vector<8x128xf32>
    %372 = arith.addf %370, %371 : vector<8x128xf32>
    %373 = arith.select %5, %368, %372 : vector<8x128xi1>, vector<8x128xf32>
    %c64_i32_204 = arith.constant 64 : i32
    %374 = tpu.dynamic_rotate %373 by %c64_i32_204 dim 1 : vector<8x128xf32>, i32 -> vector<8x128xf32>
    %375 = arith.mulf %373, %374 : vector<8x128xf32>
    %376 = arith.mulf %373, %360 : vector<8x128xf32>
    %c96_i32_205 = arith.constant 96 : i32
    %377 = tpu.dynamic_rotate %376 by %c96_i32_205 dim 1 : vector<8x128xf32>, i32 -> vector<8x128xf32>
    %378 = arith.addf %375, %377 : vector<8x128xf32>
    %379 = math.tanh %378 : vector<8x128xf32>
    %c96_i32_206 = arith.constant 96 : i32
    %380 = tpu.dynamic_rotate %379 by %c96_i32_206 dim 1 : vector<8x128xf32>, i32 -> vector<8x128xf32>
    %381 = arith.mulf %373, %380 : vector<8x128xf32>
    %c32_i32_207 = arith.constant 32 : i32
    %382 = tpu.dynamic_rotate %378 by %c32_i32_207 dim 1 : vector<8x128xf32>, i32 -> vector<8x128xf32>
    %c7_208 = arith.constant 7 : index
    %c0_209 = arith.constant 0 : index
    %c0_210 = arith.constant 0 : index
    %383 = vector.load %arg12[%c7_208, %c0_209, %c0_210] : memref<8x8x128xf32, #tpu.memory_space<vmem>>, vector<1x8x128xf32>
    %384 = vector.shape_cast %383 : vector<1x8x128xf32> to vector<8x128xf32>
    %cst_211 = arith.constant dense<0.000000e+00> : vector<8x128xf32>
    %385 = tpu.matmul %381, %218, %cst_211 {dimension_numbers = #tpu.dot_dimension_numbers<[1], [0], [0], [1], [0, 0, 1, 1], [], []>} : vector<8x128xf32>, vector<128x128xf32>, vector<8x128xf32> -> vector<8x128xf32>
    %386 = arith.addf %384, %385 : vector<8x128xf32>
    %cst_212 = arith.constant 5.000000e-01 : f32
    %387 = vector.broadcast %cst_212 : f32 to vector<8x128xf32>
    %388 = arith.mulf %387, %386 : vector<8x128xf32>
    %389 = arith.select %5, %386, %388 : vector<8x128xi1>, vector<8x128xf32>
    %390 = math.tanh %389 : vector<8x128xf32>
    %cst_213 = arith.constant 5.000000e-01 : f32
    %391 = vector.broadcast %cst_213 : f32 to vector<8x128xf32>
    %392 = arith.mulf %391, %390 : vector<8x128xf32>
    %cst_214 = arith.constant 5.000000e-01 : f32
    %393 = vector.broadcast %cst_214 : f32 to vector<8x128xf32>
    %394 = arith.addf %392, %393 : vector<8x128xf32>
    %395 = arith.select %5, %390, %394 : vector<8x128xi1>, vector<8x128xf32>
    %c64_i32_215 = arith.constant 64 : i32
    %396 = tpu.dynamic_rotate %395 by %c64_i32_215 dim 1 : vector<8x128xf32>, i32 -> vector<8x128xf32>
    %397 = arith.mulf %395, %396 : vector<8x128xf32>
    %398 = arith.mulf %395, %382 : vector<8x128xf32>
    %c96_i32_216 = arith.constant 96 : i32
    %399 = tpu.dynamic_rotate %398 by %c96_i32_216 dim 1 : vector<8x128xf32>, i32 -> vector<8x128xf32>
    %400 = arith.addf %397, %399 : vector<8x128xf32>
    %401 = math.tanh %400 : vector<8x128xf32>
    %c96_i32_217 = arith.constant 96 : i32
    %402 = tpu.dynamic_rotate %401 by %c96_i32_217 dim 1 : vector<8x128xf32>, i32 -> vector<8x128xf32>
    %403 = arith.mulf %395, %402 : vector<8x128xf32>
    %c0_218 = arith.constant 0 : index
    %c0_219 = arith.constant 0 : index
    %404 = vector.load %arg8[%c0_218, %c0_219] : memref<128x128xf32, #tpu.memory_space<vmem>>, vector<128x128xf32>
    %cst_220 = arith.constant dense<0.000000e+00> : vector<8x128xf32>
    %405 = tpu.matmul %403, %404, %cst_220 {dimension_numbers = #tpu.dot_dimension_numbers<[1], [0], [0], [1], [0, 0, 1, 1], [], []>} : vector<8x128xf32>, vector<128x128xf32>, vector<8x128xf32> -> vector<8x128xf32>
    %c0_221 = arith.constant 0 : index
    %c0_222 = arith.constant 0 : index
    %406 = vector.load %arg9[%c0_221, %c0_222] : memref<1x128xf32, #tpu.memory_space<vmem>>, vector<1x128xf32>
    %407 = vector.broadcast %406 : vector<1x128xf32> to vector<8x128xf32>
    %408 = arith.addf %405, %407 : vector<8x128xf32>
    %c0_223 = arith.constant 0 : index
    %c0_224 = arith.constant 0 : index
    %409 = vector.load %arg10[%c0_223, %c0_224] : memref<8x128xf32, #tpu.memory_space<vmem>>, vector<8x128xf32>
    tpu.vector_store %arg10[%c0_223, %c0_224], %408 {strides = array<i32>} : memref<8x128xf32, #tpu.memory_space<vmem>>, vector<8x128xf32>,
    return
  }
  func.func @transform_0(%arg0: i32) -> (i32, i32, i32) {
    %c0_i32 = arith.constant 0 : i32
    %c0_i32_0 = arith.constant 0 : i32
    %c0_i32_1 = arith.constant 0 : i32
    return %c0_i32, %arg0, %c0_i32_0 : i32, i32, i32
  }
  func.func @transform_1(%arg0: i32) -> (i32, i32) {
    %c0_i32 = arith.constant 0 : i32
    %c0_i32_0 = arith.constant 0 : i32
    %c0_i32_1 = arith.constant 0 : i32
    return %c0_i32, %c0_i32_0 : i32, i32
  }
  func.func @transform_2(%arg0: i32) -> (i32, i32) {
    %c0_i32 = arith.constant 0 : i32
    %c0_i32_0 = arith.constant 0 : i32
    %c0_i32_1 = arith.constant 0 : i32
    return %c0_i32, %c0_i32_0 : i32, i32
  }
  func.func @transform_3(%arg0: i32) -> (i32, i32) {
    %c0_i32 = arith.constant 0 : i32
    %c0_i32_0 = arith.constant 0 : i32
    %c0_i32_1 = arith.constant 0 : i32
    return %c0_i32, %c0_i32_0 : i32, i32
  }
  func.func @transform_4(%arg0: i32) -> (i32, i32) {
    %c0_i32 = arith.constant 0 : i32
    %c0_i32_0 = arith.constant 0 : i32
    %c0_i32_1 = arith.constant 0 : i32
    return %c0_i32, %c0_i32_0 : i32, i32
  }
  func.func @transform_5(%arg0: i32) -> (i32, i32) {
    %c0_i32 = arith.constant 0 : i32
    %c0_i32_0 = arith.constant 0 : i32
    %c0_i32_1 = arith.constant 0 : i32
    return %c0_i32, %c0_i32_0 : i32, i32
  }
  func.func @transform_6(%arg0: i32) -> (i32, i32) {
    %c0_i32 = arith.constant 0 : i32
    %c0_i32_0 = arith.constant 0 : i32
    %c0_i32_1 = arith.constant 0 : i32
    return %c0_i32, %c0_i32_0 : i32, i32
  }
  func.func @transform_7(%arg0: i32) -> (i32, i32) {
    %c0_i32 = arith.constant 0 : i32
    %c0_i32_0 = arith.constant 0 : i32
    %c0_i32_1 = arith.constant 0 : i32
    return %c0_i32, %c0_i32_0 : i32, i32
  }
  func.func @transform_8(%arg0: i32) -> (i32, i32) {
    %c0_i32 = arith.constant 0 : i32
    %c0_i32_0 = arith.constant 0 : i32
    %c0_i32_1 = arith.constant 0 : i32
    return %c0_i32, %c0_i32_0 : i32, i32
  }
  func.func @transform_9(%arg0: i32) -> (i32, i32) {
    %c0_i32 = arith.constant 0 : i32
    %c0_i32_0 = arith.constant 0 : i32
    return %arg0, %c0_i32 : i32, i32
  }
}

</mosaic_0001>

<bundles_post_ra>
// kernel: tpu_custom_call.1
= control target key start
LH: loop header
LB: loop body
LE: loop exit
PB: predicated region body
PF: predicated region fallthrough
CT: control target
= control target key end

     0   :  { %s5109_s0 = inlined_call_operand.vmem [shape: f32[8,16,4], index: 0, kind: input, shape index: {}]   ;;  %s5110_s1 = inlined_call_operand.vmem [shape: f32[4,128], index: 1, kind: input, shape index: {}]   ;;  %s5111_s2 = inlined_call_operand.vmem [shape: f32[128,128], index: 2, kind: input, shape index: {}]   ;;  %s5112_s3 = inlined_call_operand.vmem [shape: f32[1,128], index: 3, kind: input, shape index: {}]   ;;  %s5113_s4 = inlined_call_operand.hbm [shape: f32[128,128], index: 4, kind: input, shape index: {}]   ;;  %s5114_s5 = inlined_call_operand.hbm [shape: f32[128,128], index: 5, kind: input, shape index: {}]   ;;  %s5115_s6 = inlined_call_operand.vmem [shape: f32[1,128], index: 6, kind: input, shape index: {}]   ;;  %s5116_s7 = inlined_call_operand.hbm [shape: f32[128,128], index: 7, kind: input, shape index: {}]   ;;  %s5117_s8 = inlined_call_operand.vmem [shape: f32[1,128], index: 8, kind: input, shape index: {}]   ;;  %s5118_s9 = inlined_call_operand.hbm [shape: f32[16,128], index: 9, kind: output, shape index: {}]  }
   0x1   :  { %5127 = sst [smem:[#allocation19_spill]] %s5117_s8 }
   0x2   :  { %5128 = sst [smem:[#allocation20_spill]] %s5118_s9 }
   0x3   :  { %14 = vsyncpa [#allocation6], 0 }
   0x4   :  { %15 = vsyncpa [#allocation9], 0 }
   0x5   :  { %16 = vsyncpa [#allocation7], 0 }
   0x6   :  { %18 = vsyncpa [#allocation7 + $0x1], 0  ;;  %s4259_s30 = smov 0   ;;  %s4261_s10 = smov 0  }
   0x7   :  { %s4263_s11 = smov 0   ;;  %s4265_s12 = smov 0  }
   0x8 LB: > { %5129 = sst [smem:[#allocation15_spill]] %s4183_s30  ;;  %s4280_s13 = sadd.s32 4294967295, %s4195_s12   ;;  %s4195_s12 = sphi %s4265_s12, %s5153_s12   ;;  %s4191_s11 = sphi %s4263_s11, %s5157_s11   ;;  %s4187_s10 = sphi %s4261_s10, %s5156_s10   ;;  %s4183_s30 = sphi %s4259_s30, %s5155_s30  }
   0x9   : > { %s2454_s14 = sadd.s32 4294967294, %s4195_s12   ;;  %s4284_s15 = sadd.s32 1, %s4195_s12  }
   0xa   : > { %5130 = sst [smem:[#allocation16_spill]] %s4284_s15  ;;  %s31_s16 = sadd.s32 1, %s4191_s11 }
   0xb   : > { %s28_s17 = ssub.s32 %s4195_s12, %s4284_s15  ;;  %p38_p0 = scmp.ne.s32.totalorder %s4191_s11, %s4187_s10 }
   0xc   : > { %p29_p1 = scmp.eq.s32.totalorder %s28_s17, 0  ;;  %p39_p2 = scmp.eq.s32.totalorder %s4195_s12, 0 }
   0xd   : > { %p236_p3 = scmp.eq.s32.totalorder %s4280_s13, 1  ;;  %p241_p4 = scmp.ne.s32.totalorder %s4187_s10, %s4183_s30 }
   0xe   : > { %s4296_s18 = scalar_select %p29_p1, %s4191_s11, %s31_s16  }
   0xf   : > { %p4298_p5 = por %p39_p2, %p38_p0  ;;  %p4302_p6 = por %p236_p3, %p38_p0 }
  0x10   : > { %5131 = sst [smem:[#allocation17_spill]] %s4296_s18  ;;  %p242_p7 = scmp.eq.s32.totalorder %s2454_s14, 1 }
  0x11   : > { %s5132_s19 = scalar_select %p4298_p5, 1, 0 }
  0x12   : > { %s5133_s20 = scalar_select %p4302_p6, 1, 0 }
  0x13   : > { %p2455_p8 = scmp.ge.s32.totalorder %s4195_s12, 1  ;;  %p249_p9 = scmp.lt.s32.totalorder %s4195_s12, 3 }
  0x14   : > { %p4308_p10 = por %p242_p7, %p241_p4  ;;  %p5121_p11 = scmp.eq.s32.totalorder %s4280_s13, 0 }
  0x15   : > { %p4313_p12 = pnand %p2455_p8, %p249_p9  ;;  %s4197_s23 = smov [#allocation8]  }
  0x16   : > { %s5134_s21 = scalar_select %p4308_p10, 1, 0 }
  0x17   : > { %s5136_s22 = scalar_select %p4313_p12, 1, 0 }
  0x18   : > { %5135 = sst [smem:[#allocation18_spill]] %s5134_s21  ;;  %p3913_p13 = pneg %p4313_p12 }
  0x19   : > { %s283_s24 = sshll.u32 %s4197_s23, 4  ;;  %s4198_s26 = smov [#allocation5]   ;;  %s4319_s24 = int_to_ptr.vmem [resolvable:$true] %s283_s24 }
  0x1a   : > { %p4323_p0 = pnand %p5121_p11, %p3913_p13  ;;  %s270_s27 = sshll.u32 %s4198_s26, 4  ;;  %s4327_s27 = int_to_ptr.vmem [resolvable:$true] %s270_s27 }
  0x1b   : > { %s4199_s28 = smov [#allocation10]   ;;  %s4041_s17 = scalar_lea.hbm %s5114_s5, 2048 }
  0x1c   : > { %s4329_s29 = sshll.u32 %s4199_s28, 4  ;;  %p4042_p1 = scmp.ne.s32.totalorder %s5114_s5, %s4041_s17  ;;  %s300_s29 = int_to_ptr.vmem [resolvable:$true] %s4329_s29 }
  0x1d   : > { %p4339_p2 = pneg %p4323_p0  ;;  %p4048_p7 = scmp.lt.u32.totalorder %s4041_s17, %s5114_s5 }
  0x1f   : > { %p4044_p3 = pnand %p4339_p2, %p4042_p1 }
  0x21   : > { %p4045_p4 = pneg %p4044_p3 }
  0x23   : > { %p4050_p8 = pnand %p4048_p7, %p4045_p4 }
  0x25   : > { %4053 = shalt.err (!%p4050_p8)
}
  0x26   : > { %s4054_s18 = scalar_lea.vmem %s4319_s24, 2048  ;;  %p4062_p10 = scmp.lt.s32.totalorder %s4319_s24, %s4319_s24 }
  0x27   : > { %p4055_p9 = scmp.ne.s32.totalorder %s4319_s24, %s4054_s18  ;;  %p4063_p6 = scmp.lt.s32.totalorder %s4054_s18, %s4054_s18 }
  0x29   : > { %p4057_p13 = pnand %p4055_p9, %p4339_p2  ;;  %p4064_p1 = por %p4063_p6, %p4062_p10 }
  0x2b   : > { %p4058_p11 = pneg %p4057_p13 }
  0x2d   : > { %p4065_p3 = pnand %p4064_p1, %p4058_p11 }
  0x2f   : > { %4068 = shalt.err (!%p4065_p3)
}
  0x30   : > { %s4200_s14 = smov 128   ;;  %s4201_s16 = smov 8  }
  0x31   : > { %3919 = dma.hbm_to_vmem [thread:$0]  (!%p4323_p0), %s5114_s5, 2048, %s4319_s24, [#allocation9], %s4200_s14, %s4200_s14, %s4201_s16  }
  0x32   : > { %s4069_s18 = scalar_lea.hbm %s5113_s4, 2048 }
  0x33   : > { %p4070_p6 = scmp.ne.s32.totalorder %s5113_s4, %s4069_s18  ;;  %p4076_p4 = scmp.lt.u32.totalorder %s4069_s18, %s5113_s4 }
  0x35   : > { %p4072_p10 = pnand %p4070_p6, %p4339_p2 }
  0x37   : > { %p4073_p11 = pneg %p4072_p10 }
  0x39   : > { %p4078_p7 = pnand %p4076_p4, %p4073_p11 }
  0x3b   : > { %4081 = shalt.err (!%p4078_p7)
}
  0x3c   : > { %s4082_s24 = scalar_lea.vmem %s4327_s27, 2048  ;;  %p4090_p1 = scmp.lt.s32.totalorder %s4327_s27, %s4327_s27 }
  0x3d   : > { %p4083_p8 = scmp.ne.s32.totalorder %s4327_s27, %s4082_s24  ;;  %p4091_p3 = scmp.lt.s32.totalorder %s4082_s24, %s4082_s24 }
  0x3f   : > { %p4085_p9 = pnand %p4083_p8, %p4339_p2  ;;  %p4092_p6 = por %p4091_p3, %p4090_p1 }
  0x41   : > { %p4086_p13 = pneg %p4085_p9 }
  0x43   : > { %p4093_p10 = pnand %p4092_p6, %p4086_p13 }
  0x45   : > { %4096 = shalt.err (!%p4093_p10)
}
  0x46   : > { %3916 = dma.hbm_to_vmem [thread:$0]  (!%p4323_p0), %s5113_s4, 2048, %s4327_s27, [#allocation6], %s4200_s14, %s4200_s14, %s4201_s16  }
  0x47   : > { %s4097_s17 = scalar_lea.hbm %s5116_s7, 2048 }
  0x48   : > { %p4098_p11 = scmp.ne.s32.totalorder %s5116_s7, %s4097_s17  ;;  %p4104_p8 = scmp.lt.u32.totalorder %s4097_s17, %s5116_s7 }
  0x4a   : > { %p4100_p4 = pnand %p4098_p11, %p4339_p2 }
  0x4c   : > { %p4101_p7 = pneg %p4100_p4 }
  0x4e   : > { %p4106_p9 = pnand %p4104_p8, %p4101_p7 }
  0x50   : > { %4109 = shalt.err (!%p4106_p9)
}
  0x51   : > { %s4110_s24 = scalar_lea.vmem %s300_s29, 2048  ;;  %p4118_p6 = scmp.lt.s32.totalorder %s300_s29, %s300_s29 }
  0x52   : > { %p4111_p13 = scmp.ne.s32.totalorder %s300_s29, %s4110_s24  ;;  %p4119_p10 = scmp.lt.s32.totalorder %s4110_s24, %s4110_s24 }
  0x54   : > { %p4113_p1 = pnand %p4111_p13, %p4339_p2  ;;  %p4120_p12 = por %p4119_p10, %p4118_p6 }
  0x56   : > { %p4114_p3 = pneg %p4113_p1 }
  0x58   : > { %p4121_p5 = pnand %p4120_p12, %p4114_p3 }
  0x5a   : > { %4124 = shalt.err (!%p4121_p5)
}
  0x5b   : > { %3922 = dma.hbm_to_vmem [thread:$0]  (!%p4323_p0), %s5116_s7, 2048, %s300_s29, [#allocation9], %s4200_s14, %s4200_s14, %s4201_s16  }
  0x5c   : > { %p2459_p11 = scmp.ge.s32.totalorder %s4195_s12, 2 }
  0x5d   : > { %p5139_p2 = scmp.ne.s32.totalorder (!%p2459_p11), %s5132_s19, 0 }
  0x5e   : > { %312 = sbr.rel (%p2459_p11) target bundleno = 109 (0x6d), region = 48 }
  0x65   : > { %315 = sbr.rel (!%p5139_p2) target bundleno = 109 (0x6d), region = 52  ;;  %s317_s15 = sand.u32 (%p5139_p2), 1, %s4191_s11  }
  0x66   : > { %s2461_s9 = sshll.u32 (%p5139_p2), %s4195_s12, 3  ;;  %s2460_s25 = sshll.u32 (%p5139_p2), %s317_s15, 6 }
  0x67   : > { %s321_s17 = scalar_lea.vmem (%p5139_p2), %s5109_s0, %s2461_s9  ;;  %s319_s29 = scalar_lea.vmem (%p5139_p2), [#allocation4], %s2460_s25 }
  0x68   : > { %v363_v0 = vld [vmem:[%s321_s17] sm:$0xff] (%p5139_p2)  ;;  %v365_v1 = vld [vmem:[%s321_s17 + $0x10] sm:$0xff] (%p5139_p2) }
  0x69   : > { %v367_v2 = vld [vmem:[%s321_s17 + $0x20] sm:$0xff] (%p5139_p2)  ;;  %364 = vst [vmem:[%s319_s29] sm:$0xff] (%p5139_p2), %v363_v0  ;;  %366 = vst [vmem:[%s319_s29 + $0x8] sm:$0xff] (%p5139_p2), %v365_v1  ;;  %v369_v3 = vld [vmem:[%s321_s17 + $0x30] sm:$0xff] (%p5139_p2) }
  0x6a   : > { %368 = vst [vmem:[%s319_s29 + $0x10] sm:$0xff] (%p5139_p2), %v367_v2  ;;  %v371_v4 = vld [vmem:[%s321_s17 + $0x40] sm:$0xff] (%p5139_p2)  ;;  %v373_v5 = vld [vmem:[%s321_s17 + $0x50] sm:$0xff] (%p5139_p2)  ;;  %370 = vst [vmem:[%s319_s29 + $0x18] sm:$0xff] (%p5139_p2), %v369_v3 }
  0x6b   : > { %372 = vst [vmem:[%s319_s29 + $0x20] sm:$0xff] (%p5139_p2), %v371_v4  ;;  %374 = vst [vmem:[%s319_s29 + $0x28] sm:$0xff] (%p5139_p2), %v373_v5  ;;  %v375_v6 = vld [vmem:[%s321_s17 + $0x60] sm:$0xff] (%p5139_p2)  ;;  %v377_v7 = vld [vmem:[%s321_s17 + $0x70] sm:$0xff] (%p5139_p2) }
  0x6c   : > { %376 = vst [vmem:[%s319_s29 + $0x30] sm:$0xff] %v375_v6  ;;  %378 = vst [vmem:[%s319_s29 + $0x38] sm:$0xff] %v377_v7 }
  0x6d PF: > { %p5140_p5 = scmp.ne.s32.totalorder %s5136_s22, 0 }
  0x6e   : > { %s4424_s19 = sand.u32 (!%p5140_p5), 1, %s4187_s10   ;;  %p5141_p12 = scmp.eq.s32.totalorder (!%p5140_p5), %s4280_s13, 0 }
  0x6f   : > { %387 = sbr.rel (%p5140_p5) target bundleno = 7620 (0x1dc4), region = 90  ;;  %s2463_s14 = sshll.u32 (!%p5140_p5), %s4424_s19, 6 }
  0x70   : > { %s4427_s16 = scalar_lea.vmem (!%p5140_p5), [#allocation4], %s2463_s14 }
  0x76   : > { %4170 = dma.done.wait (%p5141_p12), [#allocation6], 2048   ;;  %p5142_p0 = pmov %p5141_p12 }
  0x78   : > { %4172 = vsyncadd (%p5142_p0), [#allocation6], 4294965248  ;;  %p5143_p4 = pmov %p5142_p0 }
  0x79   : > { %p5144_p7 = pmov %p5142_p0 }
  0x7a   : > { %4174 = dma.done.wait (%p5143_p4), [#allocation9], 4096  }
  0x7b   : > { %4176 = vsyncadd (%p5144_p7), [#allocation9], 4294963200  ;;  %v4202_v8 = vmov 0.0|0.0   ;;  %vm4203_vm0 = vmmov 0   ;;  %v4204_v9 = vmov 0.0   ;;  %v443_v10 = vld [vmem:[%s5111_s2] sm:$0xff]  ;;  %v437_v39 = vlaneseq }
  0x7c   : > { %3459 = vmatprep.subr.bf16.mxu1 %v4202_v8  ;;  %2852 = vmatprep.mubr.msk.f32.mxu1 %vm4203_vm0, %v4204_v9  ;;  %v444_v11 = vld [vmem:[%s5111_s2 + $0x8] sm:$0xff]  ;;  %v445_v12 = vld [vmem:[%s5111_s2 + $0x10] sm:$0xff]  ;;  %v446_v14 = vld [vmem:[%s5111_s2 + $0x18] sm:$0xff]  ;;  %vm499_vm1 = vcmask 1043456   ;;  %vm474_vm2 = vcmask 31744   ;;  %s4205_s18 = smov 64  }
  0x7d   : > { %v4449_v13 = vpack.c.bf16 %v444_v11, %v443_v10  ;;  %v4455_v15 = vpack.c.bf16 %v446_v14, %v445_v12  ;;  %v447_v16 = vld [vmem:[%s5111_s2 + $0x20] sm:$0xff]  ;;  %v448_v17 = vld [vmem:[%s5111_s2 + $0x28] sm:$0xff]  ;;  %v449_v22 = vld [vmem:[%s5111_s2 + $0x30] sm:$0xff]  ;;  %v438_v41 = vand.u32 127, %v437_v39  ;;  %s4206_s24 = smov 96   ;;  %s4207_s27 = smov 32  }
  0x7e   : > { %v442_v18 = vld [vmem:[%s5110_s1] sm:$0xf]  ;;  %v461_v20 = vld [vmem:[%s4427_s16 + $0x8] sm:$0xff]  ;;  %v4471_v21 = vpack.c.bf16 %v448_v17, %v447_v16  ;;  %v450_v23 = vld [vmem:[%s5111_s2 + $0x38] sm:$0xff]  ;;  %s2467_s15 = sshll.u32 %s4424_s19, 3  ;;  %s5147_s30 = sld [smem:[#allocation19_spill]] }
  0x7f   : > { %3461 = vmatpush3.bf16.msra.mxu1 %v4449_v13  ;;  %2806 = vmatprep.subr.msk.mxu0 %vm499_vm1, %v442_v18  ;;  %v460_v19 = vld [vmem:[%s4427_s16] sm:$0xff]  ;;  %v4485_v24 = vpack.c.bf16 %v450_v23, %v449_v22  ;;  %v452_v26 = vld [vmem:[%s5111_s2 + $0x48] sm:$0xff]  ;;  %v453_v28 = vld [vmem:[%s5111_s2 + $0x50] sm:$0xff]  ;;  %vm439_vm3 = vcmp.ge.s32.totalorder %v438_v41, 64  ;;  %vm440_vm4 = vcmp.lt.s32.totalorder %v438_v41, 96  ;;  %s2481_s21 = sshll.u32 %s4280_s13, 7 }
  0x80   : > { %3462 = vmatprep.subr.bf16.mxu1 %v4202_v8  ;;  %2807 = vmatpush3.msk.msra.mxu0 %vm499_vm1, %v442_v18  ;;  %v451_v25 = vld [vmem:[%s5111_s2 + $0x40] sm:$0xff]  ;;  %v454_v29 = vld [vmem:[%s5111_s2 + $0x58] sm:$0xff]  ;;  %v456_v32 = vld [vmem:[%s5111_s2 + $0x68] sm:$0xff]  ;;  %s436_s17 = scalar_lea.vmem [#allocation11], %s2467_s15  ;;  %s5148_s23 = sld [smem:[#allocation20_spill]] }
  0x81   : > { %2808 = vmatprep.mubr.msk.f32.mxu0 %vm474_vm2, %v460_v19  ;;  %3483 = vmatprep.subr.bf16.mxu0 %v4202_v8  ;;  %v4497_v27 = vpack.c.bf16 %v452_v26, %v451_v25  ;;  %v4509_v30 = vpack.c.bf16 %v454_v29, %v453_v28  ;;  %v455_v31 = vld [vmem:[%s5111_s2 + $0x60] sm:$0xff]  ;;  %v457_v34 = vld [vmem:[%s5111_s2 + $0x70] sm:$0xff]  ;;  %v458_v35 = vld [vmem:[%s5111_s2 + $0x78] sm:$0xff]  ;;  %s2358_s29 = sshll.u32 %s436_s17, 4  ;;  %s2345_s28 = scalar_lea.sflag [#allocation7], %s4424_s19  ;;  %s5067_s29 = int_to_ptr.vmem [resolvable:$true] %s2358_s29 }
  0x82   : > { %2809 = vmatmul.mubr.msk.f32.vlgmr.msra.gmra.mrb[0].mxu0 %vm474_vm2, %v461_v20  ;;  %v4521_v33 = vpack.c.bf16 %v456_v32, %v455_v31  ;;  %v4533_v36 = vpack.c.bf16 %v458_v35, %v457_v34  ;;  %v4568_v40 = vld [vmem:[%s5112_s3] ss:$0 sm:$0xff]  ;;  %vm4571_vm5 = vmand %vm439_vm3, %vm440_vm4  ;;  %v462_v54 = vld [vmem:[%s4427_s16 + $0x10] sm:$0xff]  ;;  %p5149_p9 = scmp.ne.s32.totalorder %s5133_s20, 0  ;;  %s4208_s13 = smov [#allocation11]  }
  0x83   : > { %3464 = vmatpush3.bf16.msra.mxu1 %v4455_v15  ;;  %3485 = vmatpush3.bf16.msra.mxu0 %v4449_v13  ;;  %v463_v55 = vld [vmem:[%s4427_s16 + $0x18] sm:$0xff]  ;;  %v464_v56 = vld [vmem:[%s4427_s16 + $0x20] sm:$0xff]  ;;  %v465_v57 = vld [vmem:[%s4427_s16 + $0x28] sm:$0xff] }
  0x84   : > { %3465 = vmatprep.subr.bf16.mxu1 %v4202_v8  ;;  %3486 = vmatprep.subr.bf16.mxu0 %v4202_v8  ;;  %v466_v58 = vld [vmem:[%s4427_s16 + $0x30] sm:$0xff]  ;;  %v467_v59 = vld [vmem:[%s4427_s16 + $0x38] sm:$0xff] }
  0x85   : > { %2811 = vmatprep.mubr.msk.f32.mxu0 %vm474_vm2, %v462_v54  ;;  %v2256_v46 = vld [vmem:[#allocation10 + $0x30] sm:$0xff] }
  0x86   : > { %2812 = vmatmul.mubr.msk.f32.gmra.mrb[2].mxu0 %vm474_vm2, %v463_v55  ;;  %s5065_s26 = scalar_lea.hbm %s5148_s23, %s2481_s21 }
  0x87   : > { %3467 = vmatpush3.bf16.msra.mxu1 %v4471_v21  ;;  %3488 = vmatpush3.bf16.msra.mxu0 %v4455_v15 }
  0x88   : > { %3468 = vmatprep.subr.bf16.mxu1 %v4202_v8  ;;  %3489 = vmatprep.subr.bf16.mxu0 %v4202_v8 }
  0x89   : > { %2814 = vmatprep.mubr.msk.f32.mxu0 %vm474_vm2, %v464_v56 }
  0x8a   : > { %2815 = vmatmul.mubr.msk.f32.gmra.mrb[4].mxu0 %vm474_vm2, %v465_v57 }
  0x8b   : > { %3470 = vmatpush3.bf16.msra.mxu1 %v4485_v24  ;;  %3491 = vmatpush3.bf16.msra.mxu0 %v4471_v21 }
  0x8c   : > { %3471 = vmatprep.subr.bf16.mxu1 %v4202_v8  ;;  %3492 = vmatprep.subr.bf16.mxu0 %v4202_v8 }
  0x8d   : > { %2817 = vmatprep.mubr.msk.f32.mxu0 %vm474_vm2, %v466_v58 }
  0x8e   : > { %2818 = vmatmul.mubr.msk.f32.gmra.mrb[6].mxu0 %vm474_vm2, %v467_v59 }
  0x8f   : > { %3473 = vmatpush3.bf16.msra.mxu1 %v4497_v27  ;;  %3494 = vmatpush3.bf16.msra.mxu0 %v4485_v24 }
  0x90   : > { %3474 = vmatprep.subr.bf16.mxu1 %v4202_v8  ;;  %3495 = vmatprep.subr.bf16.mxu0 %v4202_v8 }
  0x91   : > { %2887 = vmatprep.mubr.msk.f32.mxu0 %vm4203_vm0, %v4204_v9 }
  0x93   : > { %3476 = vmatpush3.bf16.msra.mxu1 %v4509_v30  ;;  %3497 = vmatpush3.bf16.msra.mxu0 %v4497_v27 }
  0x94   : > { %3477 = vmatprep.subr.bf16.mxu1 %v4202_v8  ;;  %3498 = vmatprep.subr.bf16.mxu0 %v4202_v8 }
  0x97   : > { %3479 = vmatpush3.bf16.msra.mxu1 %v4521_v33  ;;  %3500 = vmatpush3.bf16.msra.mxu0 %v4509_v30 }
  0x98   : > { %3480 = vmatprep.subr.bf16.mxu1 %v4202_v8  ;;  %3501 = vmatprep.subr.bf16.mxu0 %v4202_v8 }
  0x9b   : > { %3482 = vmatpush3.bf16.msra.mxu1 %v4533_v36  ;;  %3503 = vmatpush3.bf16.msra.mxu0 %v4521_v33 }
  0x9c   : > { %3507 = vmatprep.subr.bf16.mxu1 %v4202_v8  ;;  %3504 = vmatprep.subr.bf16.mxu0 %v4202_v8 }
  0x9e   : > { %2853 = vmatmul.mubr.f32.vlgmr.msra.gmra.mrb[0].mxu1 %v4204_v9 }
  0x9f   : > { %3509 = vmatpush3.bf16.msra.mxu1 %v4449_v13  ;;  %2922 = vmatprep.mubr.msk.f32.mxu1 %vm4203_vm0, %v4204_v9 }
  0xa0   : > { %3510 = vmatprep.subr.bf16.mxu1 %v4202_v8  ;;  %3506 = vmatpush3.bf16.msra.mxu0 %v4533_v36 }
  0xa1   : > { %3531 = vmatprep.subr.bf16.mxu0 %v4202_v8 }
  0xa3   : > { %3512 = vmatpush3.bf16.msra.mxu1 %v4455_v15 }
  0xa4   : > { %3513 = vmatprep.subr.bf16.mxu1 %v4202_v8 }
  0xa7   : > { %3515 = vmatpush3.bf16.msra.mxu1 %v4471_v21 }
  0xa8   : > { %3516 = vmatprep.subr.bf16.mxu1 %v4202_v8 }
  0xab   : > { %3518 = vmatpush3.bf16.msra.mxu1 %v4485_v24 }
  0xac   : > { %3519 = vmatprep.subr.bf16.mxu1 %v4202_v8 }
  0xaf   : > { %3521 = vmatpush3.bf16.msra.mxu1 %v4497_v27 }
  0xb0   : > { %3522 = vmatprep.subr.bf16.mxu1 %v4202_v8 }
  0xb3   : > { %3524 = vmatpush3.bf16.msra.mxu1 %v4509_v30 }
  0xb4   : > { %3525 = vmatprep.subr.bf16.mxu1 %v4202_v8 }
  0xb7   : > { %3527 = vmatpush3.bf16.msra.mxu1 %v4521_v33 }
  0xb8   : > { %3528 = vmatprep.subr.bf16.mxu1 %v4202_v8 }
  0xbb   : > { %3530 = vmatpush3.bf16.msra.mxu1 %v4533_v36 }
  0xbc   : > { %3555 = vmatprep.subr.bf16.mxu1 %v4202_v8 }
 0x155   : > { %v4563_v37 = vpop.f32.mrb[0].mxu0 }
 0x156   : > { %v569_v38 = vpop.f32.mrb[1].mxu0  ;;  %v575_v11 = vadd.f32 %v4563_v37, %v4568_v40 }
 0x157   : > { %v570_v42 = vadd.f32 %v4568_v40, %v569_v38 }
 0x159   : > { %v4597_v1 = vpop.f32.mrb[2].mxu0 }
 0x15a   : > { %v4599_v2 = vpop.f32.mrb[3].mxu0  ;;  %v585_v59 = vadd.f32 %v4597_v1, %v4568_v40 }
 0x15b   : > { %v580_v38 = vadd.f32 %v4568_v40, %v4599_v2 }
 0x15d   : > { %v4601_v3 = vpop.f32.mrb[4].mxu0 }
 0x15e   : > { %v4603_v4 = vpop.f32.mrb[5].mxu0 }
 0x161   : > { %v4605_v5 = vpop.f32.mrb[6].mxu0 }
 0x162   : > { %v4607_v6 = vpop.f32.mrb[7].mxu0 }
 0x171   : > { %v683_v43 = vpop.f32.mrb[0].mxu1 }
 0x172   : > { %v687_v44 = vadd.f32 %v683_v43, %v570_v42  ;;  %v2854_v45 = vpop.f32.mrb[1].mxu1 }
 0x174   : > { %v688_v47 = vmul.f32 0.5, %v687_v44 }
 0x176   : > { %v689_v48 = vsel %vm4571_vm5, %v687_v44, %v688_v47 }
 0x177   : > { %3977 = vtanh.f32 %v689_v48 }
 0x181   : > { %v3978_v49 = vpop.eup %3977 }
 0x182   : > { %v691_v50 = vmul.f32 0.5, %v3978_v49 }
 0x184   : > { %v692_v51 = vadd.f32 0.5, %v691_v50 }
 0x186   : > { %v693_v52 = vsel %vm4571_vm5, %v3978_v49, %v692_v51 }
 0x187   : > { %694 = vrot.lane.b32.xlu0 %v693_v52, %s4205_s18  ;;  %v697_v53 = vmul.f32 0.0, %v693_v52 }
 0x18b   : > { %698 = vrot.lane.b32.xlu0 %v697_v53, %s4206_s24 }
 0x1f9   : > { %v695_v60 = vpop.permute.xlu0 %694 }
 0x1fa   : > { %v696_v61 = vmul.f32 %v695_v60, %v693_v52 }
 0x1fd   : > { %v699_v62 = vpop.permute.xlu0 %698 }
 0x1fe   : > { %v700_v63 = vadd.f32 %v699_v62, %v696_v61 }
 0x200   : > { %3979 = vtanh.f32 %v700_v63 }
 0x20a   : > { %v3980_v0 = vpop.eup %3979 }
 0x20b   : > { %702 = vrot.lane.b32.xlu1 %v3980_v0, %s4206_s24 }
 0x20f   : > { %705 = vrot.lane.b32.xlu1 %v700_v63, %s4207_s27 }
 0x27d   : > { %v703_v7 = vpop.permute.xlu1 %702 }
 0x27e   : > { %v4609_v10 = vmul.f32 %v703_v7, %v693_v52 }
 0x280   : > { %2888 = vmatmul.mubr.f32.vlgmr.msra.gmra.mrb[8].mxu0 %v4609_v10 }
 0x281   : > { %3533 = vmatpush3.bf16.msra.mxu0 %v4449_v13  ;;  %2957 = vmatprep.mubr.msk.f32.mxu0 %vm4203_vm0, %v4204_v9  ;;  %v706_v23 = vpop.permute.xlu1 %705 }
 0x282   : > { %3534 = vmatprep.subr.bf16.mxu0 %v4202_v8 }
 0x285   : > { %3536 = vmatpush3.bf16.msra.mxu0 %v4455_v15 }
 0x286   : > { %3537 = vmatprep.subr.bf16.mxu0 %v4202_v8 }
 0x289   : > { %3539 = vmatpush3.bf16.msra.mxu0 %v4471_v21 }
 0x28a   : > { %3540 = vmatprep.subr.bf16.mxu0 %v4202_v8 }
 0x28d   : > { %3542 = vmatpush3.bf16.msra.mxu0 %v4485_v24 }
 0x28e   : > { %3543 = vmatprep.subr.bf16.mxu0 %v4202_v8 }
 0x291   : > { %3545 = vmatpush3.bf16.msra.mxu0 %v4497_v27 }
 0x292   : > { %3546 = vmatprep.subr.bf16.mxu0 %v4202_v8 }
 0x295   : > { %3548 = vmatpush3.bf16.msra.mxu0 %v4509_v30 }
 0x296   : > { %3549 = vmatprep.subr.bf16.mxu0 %v4202_v8 }
 0x299   : > { %3551 = vmatpush3.bf16.msra.mxu0 %v4521_v33 }
 0x29a   : > { %3552 = vmatprep.subr.bf16.mxu0 %v4202_v8 }
 0x29d   : > { %3554 = vmatpush3.bf16.msra.mxu0 %v4533_v36 }
 0x29e   : > { %3579 = vmatprep.subr.bf16.mxu0 %v4202_v8 }
 0x353   : > { %v776_v12 = vpop.f32.mrb[8].mxu0 }
 0x354   : > { %v780_v14 = vadd.f32 %v776_v12, %v575_v11  ;;  %v2889_v16 = vpop.f32.mrb[9].mxu0 }
 0x356   : > { %v781_v17 = vmul.f32 0.5, %v780_v14 }
 0x358   : > { %v782_v18 = vsel %vm4571_vm5, %v780_v14, %v781_v17 }
 0x359   : > { %3981 = vtanh.f32 %v782_v18 }
 0x363   : > { %v3982_v19 = vpop.eup %3981 }
 0x364   : > { %v784_v20 = vmul.f32 0.5, %v3982_v19 }
 0x366   : > { %v785_v22 = vadd.f32 0.5, %v784_v20 }
 0x368   : > { %v786_v25 = vsel %vm4571_vm5, %v3982_v19, %v785_v22 }
 0x369   : > { %787 = vrot.lane.b32.xlu0 %v786_v25, %s4205_s18  ;;  %v790_v26 = vmul.f32 %v786_v25, %v706_v23 }
 0x36b   : > { %791 = vrot.lane.b32.xlu1 %v790_v26, %s4206_s24 }
 0x3db   : > { %v788_v28 = vpop.permute.xlu0 %787 }
 0x3dc   : > { %v789_v29 = vmul.f32 %v788_v28, %v786_v25 }
 0x3dd   : > { %v792_v31 = vpop.permute.xlu1 %791 }
 0x3de   : > { %v793_v32 = vadd.f32 %v792_v31, %v789_v29 }
 0x3e0   : > { %3983 = vtanh.f32 %v793_v32  ;;  %798 = vrot.lane.b32.xlu1 %v793_v32, %s4207_s27 }
 0x3ea   : > { %v3984_v34 = vpop.eup %3983 }
 0x3eb   : > { %795 = vrot.lane.b32.xlu0 %v3984_v34, %s4206_s24 }
 0x452   : > { %v799_v49 = vpop.permute.xlu1 %798 }
 0x45d   : > { %v796_v35 = vpop.permute.xlu0 %795 }
 0x45e   : > { %v4640_v37 = vmul.f32 %v796_v35, %v786_v25  ;;  %v590_v25 = vadd.f32 %v4568_v40, %v4603_v4 }
 0x460   : > { %2923 = vmatmul.mubr.f32.vlgmr.msra.gmra.mrb[2].mxu1 %v4640_v37 }
 0x461   : > { %3557 = vmatpush3.bf16.msra.mxu1 %v4449_v13  ;;  %2992 = vmatprep.mubr.msk.f32.mxu1 %vm4203_vm0, %v4204_v9 }
 0x462   : > { %3558 = vmatprep.subr.bf16.mxu1 %v4202_v8 }
 0x465   : > { %3560 = vmatpush3.bf16.msra.mxu1 %v4455_v15 }
 0x466   : > { %3561 = vmatprep.subr.bf16.mxu1 %v4202_v8 }
 0x469   : > { %3563 = vmatpush3.bf16.msra.mxu1 %v4471_v21 }
 0x46a   : > { %3564 = vmatprep.subr.bf16.mxu1 %v4202_v8 }
 0x46d   : > { %3566 = vmatpush3.bf16.msra.mxu1 %v4485_v24 }
 0x46e   : > { %3567 = vmatprep.subr.bf16.mxu1 %v4202_v8 }
 0x471   : > { %3569 = vmatpush3.bf16.msra.mxu1 %v4497_v27 }
 0x472   : > { %3570 = vmatprep.subr.bf16.mxu1 %v4202_v8 }
 0x475   : > { %3572 = vmatpush3.bf16.msra.mxu1 %v4509_v30 }
 0x476   : > { %3573 = vmatprep.subr.bf16.mxu1 %v4202_v8 }
 0x479   : > { %3575 = vmatpush3.bf16.msra.mxu1 %v4521_v33 }
 0x47a   : > { %3576 = vmatprep.subr.bf16.mxu1 %v4202_v8 }
 0x47d   : > { %3578 = vmatpush3.bf16.msra.mxu1 %v4533_v36 }
 0x47e   : > { %3603 = vmatprep.subr.bf16.mxu1 %v4202_v8 }
 0x533   : > { %v870_v39 = vpop.f32.mrb[2].mxu1 }
 0x534   : > { %v874_v41 = vadd.f32 %v870_v39, %v580_v38  ;;  %v2924_v42 = vpop.f32.mrb[3].mxu1 }
 0x536   : > { %v875_v43 = vmul.f32 0.5, %v874_v41 }
 0x538   : > { %v876_v44 = vsel %vm4571_vm5, %v874_v41, %v875_v43 }
 0x539   : > { %3985 = vtanh.f32 %v876_v44 }
 0x543   : > { %v3986_v45 = vpop.eup %3985 }
 0x544   : > { %v878_v47 = vmul.f32 0.5, %v3986_v45 }
 0x546   : > { %v879_v48 = vadd.f32 0.5, %v878_v47 }
 0x548   : > { %v880_v50 = vsel %vm4571_vm5, %v3986_v45, %v879_v48 }
 0x549   : > { %881 = vrot.lane.b32.xlu0 %v880_v50, %s4205_s18  ;;  %v884_v51 = vmul.f32 %v880_v50, %v799_v49 }
 0x54b   : > { %885 = vrot.lane.b32.xlu1 %v884_v51, %s4206_s24 }
 0x5bb   : > { %v882_v52 = vpop.permute.xlu0 %881 }
 0x5bc   : > { %v883_v53 = vmul.f32 %v882_v52, %v880_v50 }
 0x5bd   : > { %v886_v54 = vpop.permute.xlu1 %885 }
 0x5be   : > { %v887_v55 = vadd.f32 %v886_v54, %v883_v53 }
 0x5c0   : > { %3987 = vtanh.f32 %v887_v55  ;;  %892 = vrot.lane.b32.xlu1 %v887_v55, %s4207_s27  ;;  %v1364_v55 = vld [vmem:[#allocation5] sm:$0xff] }
 0x5ca   : > { %v3988_v56 = vpop.eup %3987 }
 0x5cb   : > { %889 = vrot.lane.b32.xlu0 %v3988_v56, %s4206_s24  ;;  %v1365_v56 = vld [vmem:[#allocation5 + $0x8] sm:$0xff] }
 0x632   : > { %v893_v12 = vpop.permute.xlu1 %892 }
 0x63d   : > { %v890_v57 = vpop.permute.xlu0 %889 }
 0x63e   : > { %v4671_v58 = vmul.f32 %v890_v57, %v880_v50 }
 0x640   : > { %2958 = vmatmul.mubr.f32.vlgmr.msra.gmra.mrb[10].mxu0 %v4671_v58 }
 0x641   : > { %3581 = vmatpush3.bf16.msra.mxu0 %v4449_v13  ;;  %3027 = vmatprep.mubr.msk.f32.mxu0 %vm4203_vm0, %v4204_v9 }
 0x642   : > { %3582 = vmatprep.subr.bf16.mxu0 %v4202_v8 }
 0x645   : > { %3584 = vmatpush3.bf16.msra.mxu0 %v4455_v15 }
 0x646   : > { %3585 = vmatprep.subr.bf16.mxu0 %v4202_v8 }
 0x649   : > { %3587 = vmatpush3.bf16.msra.mxu0 %v4471_v21 }
 0x64a   : > { %3588 = vmatprep.subr.bf16.mxu0 %v4202_v8 }
 0x64d   : > { %3590 = vmatpush3.bf16.msra.mxu0 %v4485_v24 }
 0x64e   : > { %3591 = vmatprep.subr.bf16.mxu0 %v4202_v8 }
 0x651   : > { %3593 = vmatpush3.bf16.msra.mxu0 %v4497_v27 }
 0x652   : > { %3594 = vmatprep.subr.bf16.mxu0 %v4202_v8 }
 0x655   : > { %3596 = vmatpush3.bf16.msra.mxu0 %v4509_v30 }
 0x656   : > { %3597 = vmatprep.subr.bf16.mxu0 %v4202_v8 }
 0x659   : > { %3599 = vmatpush3.bf16.msra.mxu0 %v4521_v33 }
 0x65a   : > { %3600 = vmatprep.subr.bf16.mxu0 %v4202_v8 }
 0x65d   : > { %3602 = vmatpush3.bf16.msra.mxu0 %v4533_v36 }
 0x65e   : > { %3627 = vmatprep.subr.bf16.mxu0 %v4202_v8 }
 0x713   : > { %v964_v60 = vpop.f32.mrb[10].mxu0 }
 0x714   : > { %v968_v61 = vadd.f32 %v964_v60, %v585_v59  ;;  %v2959_v62 = vpop.f32.mrb[11].mxu0  ;;  %v3651_v59 = vpack.c.bf16 %v1365_v56, %v1364_v55 }
 0x715   : > { %v1366_v62 = vld [vmem:[#allocation5 + $0x10] sm:$0xff] }
 0x716   : > { %v969_v63 = vmul.f32 0.5, %v968_v61 }
 0x718   : > { %v970_v0 = vsel %vm4571_vm5, %v968_v61, %v969_v63  ;;  %v1367_v63 = vld [vmem:[#allocation5 + $0x18] sm:$0xff] }
 0x719   : > { %3989 = vtanh.f32 %v970_v0 }
 0x723   : > { %v3990_v2 = vpop.eup %3989 }
 0x724   : > { %v972_v7 = vmul.f32 0.5, %v3990_v2 }
 0x726   : > { %v973_v11 = vadd.f32 0.5, %v972_v7  ;;  %v3655_v7 = vpack.c.bf16 %v1367_v63, %v1366_v62  ;;  %v1389_v62 = vld [vmem:[#allocation8 + $0x48] sm:$0xff] }
 0x728   : > { %v974_v14 = vsel %vm4571_vm5, %v3990_v2, %v973_v11  ;;  %v1368_v11 = vld [vmem:[#allocation5 + $0x20] sm:$0xff] }
 0x729   : > { %975 = vrot.lane.b32.xlu0 %v974_v14, %s4205_s18  ;;  %v978_v16 = vmul.f32 %v974_v14, %v893_v12  ;;  %v1369_v12 = vld [vmem:[#allocation5 + $0x28] sm:$0xff] }
 0x72b   : > { %979 = vrot.lane.b32.xlu1 %v978_v16, %s4206_s24  ;;  %v1370_v16 = vld [vmem:[#allocation5 + $0x30] sm:$0xff] }
 0x79b   : > { %v976_v1 = vpop.permute.xlu0 %975 }
 0x79c   : > { %v977_v17 = vmul.f32 %v976_v1, %v974_v14  ;;  %v1371_v1 = vld [vmem:[#allocation5 + $0x38] sm:$0xff] }
 0x79d   : > { %v980_v18 = vpop.permute.xlu1 %979 }
 0x79e   : > { %v981_v19 = vadd.f32 %v980_v18, %v977_v17  ;;  %v3663_v17 = vpack.c.bf16 %v1371_v1, %v1370_v16  ;;  %v1372_v18 = vld [vmem:[#allocation5 + $0x40] sm:$0xff]  ;;  %v1394_v16 = vld [vmem:[#allocation8 + $0x70] sm:$0xff]  ;;  %v1395_v1 = vld [vmem:[#allocation8 + $0x78] sm:$0xff] }
 0x7a0   : > { %3991 = vtanh.f32 %v981_v19  ;;  %986 = vrot.lane.b32.xlu1 %v981_v19, %s4207_s27  ;;  %v1373_v19 = vld [vmem:[#allocation5 + $0x48] sm:$0xff] }
 0x7aa   : > { %v3992_v20 = vpop.eup %3991 }
 0x7ab   : > { %983 = vrot.lane.b32.xlu0 %v3992_v20, %s4206_s24  ;;  %v3667_v20 = vpack.c.bf16 %v1373_v19, %v1372_v18 }
 0x812   : > { %v987_v39 = vpop.permute.xlu1 %986 }
 0x81d   : > { %v984_v22 = vpop.permute.xlu0 %983 }
 0x81e   : > { %v4702_v23 = vmul.f32 %v984_v22, %v974_v14  ;;  %v3659_v14 = vpack.c.bf16 %v1369_v12, %v1368_v11  ;;  %v1374_v22 = vld [vmem:[#allocation5 + $0x50] sm:$0xff]  ;;  %v1392_v11 = vld [vmem:[#allocation8 + $0x60] sm:$0xff]  ;;  %v1393_v12 = vld [vmem:[#allocation8 + $0x68] sm:$0xff] }
 0x820   : > { %2993 = vmatmul.mubr.f32.vlgmr.msra.gmra.mrb[4].mxu1 %v4702_v23 }
 0x821   : > { %3605 = vmatpush3.bf16.msra.mxu1 %v4449_v13  ;;  %3062 = vmatprep.mubr.msk.f32.mxu1 %vm4203_vm0, %v4204_v9 }
 0x822   : > { %3606 = vmatprep.subr.bf16.mxu1 %v4202_v8 }
 0x825   : > { %3608 = vmatpush3.bf16.msra.mxu1 %v4455_v15 }
 0x826   : > { %3609 = vmatprep.subr.bf16.mxu1 %v4202_v8 }
 0x829   : > { %3611 = vmatpush3.bf16.msra.mxu1 %v4471_v21 }
 0x82a   : > { %3612 = vmatprep.subr.bf16.mxu1 %v4202_v8 }
 0x82d   : > { %3614 = vmatpush3.bf16.msra.mxu1 %v4485_v24 }
 0x82e   : > { %3615 = vmatprep.subr.bf16.mxu1 %v4202_v8 }
 0x831   : > { %3617 = vmatpush3.bf16.msra.mxu1 %v4497_v27 }
 0x832   : > { %3618 = vmatprep.subr.bf16.mxu1 %v4202_v8 }
 0x835   : > { %3620 = vmatpush3.bf16.msra.mxu1 %v4509_v30 }
 0x836   : > { %3621 = vmatprep.subr.bf16.mxu1 %v4202_v8 }
 0x839   : > { %3623 = vmatpush3.bf16.msra.mxu1 %v4521_v33 }
 0x83a   : > { %3624 = vmatprep.subr.bf16.mxu1 %v4202_v8 }
 0x83d   : > { %3626 = vmatpush3.bf16.msra.mxu1 %v4533_v36 }
 0x83e   : > { %3652 = vmatprep.subr.bf16.mxu1 %v3651_v59 }
 0x8f3   : > { %v1058_v26 = vpop.f32.mrb[4].mxu1 }
 0x8f4   : > { %v1062_v28 = vadd.f32 %v1058_v26, %v590_v25  ;;  %v2994_v29 = vpop.f32.mrb[5].mxu1  ;;  %v1375_v25 = vld [vmem:[#allocation5 + $0x58] sm:$0xff] }
 0x8f5   : > { %v3671_v26 = vpack.c.bf16 %v1375_v25, %v1374_v22  ;;  %v1377_v29 = vld [vmem:[#allocation5 + $0x68] sm:$0xff] }
 0x8f6   : > { %v1063_v31 = vmul.f32 0.5, %v1062_v28 }
 0x8f8   : > { %v1064_v32 = vsel %vm4571_vm5, %v1062_v28, %v1063_v31  ;;  %v1376_v28 = vld [vmem:[#allocation5 + $0x60] sm:$0xff]  ;;  %v1378_v31 = vld [vmem:[#allocation5 + $0x70] sm:$0xff] }
 0x8f9   : > { %3993 = vtanh.f32 %v1064_v32  ;;  %v1379_v32 = vld [vmem:[#allocation5 + $0x78] sm:$0xff] }
 0x903   : > { %v3994_v34 = vpop.eup %3993 }
 0x904   : > { %v1066_v35 = vmul.f32 0.5, %v3994_v34 }
 0x906   : > { %v1067_v38 = vadd.f32 0.5, %v1066_v35  ;;  %v600_v35 = vadd.f32 %v4568_v40, %v4607_v6 }
 0x908   : > { %v1068_v41 = vsel %vm4571_vm5, %v3994_v34, %v1067_v38  ;;  %v3679_v34 = vpack.c.bf16 %v1379_v32, %v1378_v31 }
 0x909   : > { %1069 = vrot.lane.b32.xlu0 %v1068_v41, %s4205_s18  ;;  %v1072_v42 = vmul.f32 %v1068_v41, %v987_v39 }
 0x90b   : > { %1073 = vrot.lane.b32.xlu1 %v1072_v42, %s4206_s24 }
 0x97b   : > { %v1070_v4 = vpop.permute.xlu0 %1069 }
 0x97c   : > { %v1071_v43 = vmul.f32 %v1070_v4, %v1068_v41 }
 0x97d   : > { %v1074_v44 = vpop.permute.xlu1 %1073 }
 0x97e   : > { %v1075_v45 = vadd.f32 %v1074_v44, %v1071_v43 }
 0x980   : > { %3995 = vtanh.f32 %v1075_v45  ;;  %1080 = vrot.lane.b32.xlu1 %v1075_v45, %s4207_s27 }
 0x98a   : > { %v3996_v47 = vpop.eup %3995 }
 0x98b   : > { %1077 = vrot.lane.b32.xlu0 %v3996_v47, %s4206_s24 }
 0x9f2   : > { %v1081_v52 = vpop.permute.xlu1 %1080 }
 0x9fd   : > { %v1078_v48 = vpop.permute.xlu0 %1077 }
 0x9fe   : > { %v4732_v49 = vmul.f32 %v1078_v48, %v1068_v41 }
 0xa00   : > { %3028 = vmatmul.mubr.f32.vlgmr.msra.gmra.mrb[12].mxu0 %v4732_v49 }
 0xa01   : > { %3629 = vmatpush3.bf16.msra.mxu0 %v4449_v13  ;;  %3097 = vmatprep.mubr.msk.f32.mxu0 %vm4203_vm0, %v4204_v9  ;;  %v595_v13 = vadd.f32 %v4601_v3, %v4568_v40 }
 0xa02   : > { %3630 = vmatprep.subr.bf16.mxu0 %v4202_v8 }
 0xa05   : > { %3632 = vmatpush3.bf16.msra.mxu0 %v4455_v15 }
 0xa06   : > { %3633 = vmatprep.subr.bf16.mxu0 %v4202_v8 }
 0xa09   : > { %3635 = vmatpush3.bf16.msra.mxu0 %v4471_v21 }
 0xa0a   : > { %3636 = vmatprep.subr.bf16.mxu0 %v4202_v8 }
 0xa0d   : > { %3638 = vmatpush3.bf16.msra.mxu0 %v4485_v24 }
 0xa0e   : > { %3639 = vmatprep.subr.bf16.mxu0 %v4202_v8 }
 0xa11   : > { %3641 = vmatpush3.bf16.msra.mxu0 %v4497_v27 }
 0xa12   : > { %3642 = vmatprep.subr.bf16.mxu0 %v4202_v8 }
 0xa15   : > { %3644 = vmatpush3.bf16.msra.mxu0 %v4509_v30 }
 0xa16   : > { %3645 = vmatprep.subr.bf16.mxu0 %v4202_v8 }
 0xa19   : > { %3647 = vmatpush3.bf16.msra.mxu0 %v4521_v33 }
 0xa1a   : > { %3648 = vmatprep.subr.bf16.mxu0 %v4202_v8 }
 0xa1d   : > { %3650 = vmatpush3.bf16.msra.mxu0 %v4533_v36 }
 0xa1e   : > { %3683 = vmatprep.subr.bf16.mxu0 %v4202_v8 }
 0xad3   : > { %v1152_v15 = vpop.f32.mrb[12].mxu0 }
 0xad4   : > { %v1156_v21 = vadd.f32 %v1152_v15, %v595_v13  ;;  %v3029_v24 = vpop.f32.mrb[13].mxu0 }
 0xad6   : > { %v1157_v27 = vmul.f32 0.5, %v1156_v21 }
 0xad8   : > { %v1158_v30 = vsel %vm4571_vm5, %v1156_v21, %v1157_v27 }
 0xad9   : > { %3997 = vtanh.f32 %v1158_v30 }
 0xae3   : > { %v3998_v50 = vpop.eup %3997 }
 0xae4   : > { %v1160_v51 = vmul.f32 0.5, %v3998_v50 }
 0xae6   : > { %v1161_v33 = vadd.f32 0.5, %v1160_v51  ;;  %v1381_v51 = vld [vmem:[#allocation8 + $0x8] sm:$0xff] }
 0xae8   : > { %v1162_v36 = vsel %vm4571_vm5, %v3998_v50, %v1161_v33  ;;  %v1380_v50 = vld [vmem:[#allocation8] sm:$0xff] }
 0xae9   : > { %1163 = vrot.lane.b32.xlu0 %v1162_v36, %s4205_s18  ;;  %v1166_v53 = vmul.f32 %v1162_v36, %v1081_v52  ;;  %v4789_v33 = vpack.c.bf16 %v1381_v51, %v1380_v50  ;;  %v1382_v52 = vld [vmem:[#allocation8 + $0x10] sm:$0xff] }
 0xaeb   : > { %1167 = vrot.lane.b32.xlu1 %v1166_v53, %s4206_s24 }
 0xb5b   : > { %v1164_v3 = vpop.permute.xlu0 %1163 }
 0xb5c   : > { %v1165_v54 = vmul.f32 %v1164_v3, %v1162_v36  ;;  %v1384_v3 = vld [vmem:[#allocation8 + $0x20] sm:$0xff] }
 0xb5d   : > { %v1168_v57 = vpop.permute.xlu1 %1167 }
 0xb5e   : > { %v1169_v60 = vadd.f32 %v1168_v57, %v1165_v54  ;;  %v1385_v54 = vld [vmem:[#allocation8 + $0x28] sm:$0xff]  ;;  %v1386_v57 = vld [vmem:[#allocation8 + $0x30] sm:$0xff] }
 0xb5f   : > { %v4798_v55 = vpack.c.bf16 %v1385_v54, %v1384_v3 }
 0xb60   : > { %3999 = vtanh.f32 %v1169_v60  ;;  %1174 = vrot.lane.b32.xlu1 %v1169_v60, %s4207_s27 }
 0xb6a   : > { %v4000_v61 = vpop.eup %3999 }
 0xb6b   : > { %1171 = vrot.lane.b32.xlu0 %v4000_v61, %s4206_s24  ;;  %v1388_v61 = vld [vmem:[#allocation8 + $0x40] sm:$0xff] }
 0xb6c   : > { %v4807_v63 = vpack.c.bf16 %v1389_v62, %v1388_v61 }
 0xbdd   : > { %v1172_v0 = vpop.permute.xlu0 %1171 }
 0xbde   : > { %v1173_v2 = vmul.f32 %v1172_v0, %v1162_v36  ;;  %v1383_v36 = vld [vmem:[#allocation8 + $0x18] sm:$0xff]  ;;  %v1390_v0 = vld [vmem:[#allocation8 + $0x50] sm:$0xff] }
 0xbdf   : > { %v4794_v53 = vpack.c.bf16 %v1383_v36, %v1382_v52 }
 0xbe0   : > { %3063 = vmatmul.mubr.f32.vlgmr.msra.gmra.mrb[6].mxu1 %v1173_v2 }
 0xbe1   : > { %3654 = vmatpush3.bf16.msra.mxu1 %v3651_v59  ;;  %3132 = vmatprep.mubr.f32.mxu1 %v4609_v10  ;;  %v3675_v10 = vpack.c.bf16 %v1377_v29, %v1376_v28  ;;  %v1387_v59 = vld [vmem:[#allocation8 + $0x38] sm:$0xff] }
 0xbe2   : > { %3656 = vmatprep.subr.bf16.mxu1 %v3655_v7  ;;  %v4803_v60 = vpack.c.bf16 %v1387_v59, %v1386_v57 }
 0xbe5   : > { %3658 = vmatpush3.bf16.msra.mxu1 %v3655_v7 }
 0xbe6   : > { %3660 = vmatprep.subr.bf16.mxu1 %v3659_v14 }
 0xbe9   : > { %3662 = vmatpush3.bf16.msra.mxu1 %v3659_v14  ;;  %v4815_v14 = vpack.c.bf16 %v1393_v12, %v1392_v11 }
 0xbea   : > { %3664 = vmatprep.subr.bf16.mxu1 %v3663_v17 }
 0xbed   : > { %3666 = vmatpush3.bf16.msra.mxu1 %v3663_v17  ;;  %v4819_v17 = vpack.c.bf16 %v1395_v1, %v1394_v16 }
 0xbee   : > { %3668 = vmatprep.subr.bf16.mxu1 %v3667_v20 }
 0xbf1   : > { %3670 = vmatpush3.bf16.msra.mxu1 %v3667_v20  ;;  %v605_v20 = vadd.f32 %v4605_v5, %v4568_v40  ;;  %v4871_v40 = vld [vmem:[%s5115_s6] ss:$0 sm:$0xff] }
 0xbf2   : > { %3672 = vmatprep.subr.bf16.mxu1 %v3671_v26 }
 0xbf5   : > { %3674 = vmatpush3.bf16.msra.mxu1 %v3671_v26 }
 0xbf6   : > { %3676 = vmatprep.subr.bf16.mxu1 %v3675_v10 }
 0xbf9   : > { %3678 = vmatpush3.bf16.msra.mxu1 %v3675_v10 }
 0xbfa   : > { %3680 = vmatprep.subr.bf16.mxu1 %v3679_v34 }
 0xbfd   : > { %3682 = vmatpush3.bf16.msra.mxu1 %v3679_v34 }
 0xbfe   : > { %3707 = vmatprep.subr.bf16.mxu1 %v4202_v8 }
 0xc00   : > { %3133 = vmatmul.mubr.f32.vlgmr.msra.gmra.mrb[8].mxu1 %v4640_v37 }
 0xc01   : > { %3135 = vmatprep.mubr.f32.mxu1 %v4671_v58  ;;  %v1175_v58 = vpop.permute.xlu1 %1174  ;;  %3709 = vmatpush3.bf16.msra.mxu1 %v4789_v33 }
 0xc02   : > { %3710 = vmatprep.subr.bf16.mxu1 %v4202_v8 }
 0xc04   : > { %3136 = vmatmul.mubr.f32.gmra.mrb[10].mxu1 %v4702_v23 }
 0xc05   : > { %3138 = vmatprep.mubr.f32.mxu1 %v4732_v49  ;;  %3712 = vmatpush3.bf16.msra.mxu1 %v4794_v53 }
 0xc06   : > { %3713 = vmatprep.subr.bf16.mxu1 %v4202_v8 }
 0xc08   : > { %3139 = vmatmul.mubr.f32.gmra.mrb[12].mxu1 %v1173_v2  ;;  %v1391_v2 = vld [vmem:[#allocation8 + $0x58] sm:$0xff] }
 0xc09   : > { %3715 = vmatpush3.bf16.msra.mxu1 %v4798_v55  ;;  %v4811_v7 = vpack.c.bf16 %v1391_v2, %v1390_v0 }
 0xc0a   : > { %3716 = vmatprep.subr.bf16.mxu1 %v4202_v8 }
 0xc0d   : > { %3718 = vmatpush3.bf16.msra.mxu1 %v4803_v60 }
 0xc0e   : > { %3719 = vmatprep.subr.bf16.mxu1 %v4202_v8 }
 0xc11   : > { %3721 = vmatpush3.bf16.msra.mxu1 %v4807_v63 }
 0xc12   : > { %3722 = vmatprep.subr.bf16.mxu1 %v4202_v8 }
 0xc15   : > { %3724 = vmatpush3.bf16.msra.mxu1 %v4811_v7 }
 0xc16   : > { %3725 = vmatprep.subr.bf16.mxu1 %v4202_v8 }
 0xc19   : > { %3727 = vmatpush3.bf16.msra.mxu1 %v4815_v14 }
 0xc1a   : > { %3728 = vmatprep.subr.bf16.mxu1 %v4202_v8 }
 0xc1d   : > { %3730 = vmatpush3.bf16.msra.mxu1 %v4819_v17 }
 0xc1e   : > { %3755 = vmatprep.subr.bf16.mxu1 %v4202_v8 }
 0xcb3   : > { %v1246_v38 = vpop.f32.mrb[6].mxu1 }
 0xcb4   : > { %v1250_v39 = vadd.f32 %v1246_v38, %v600_v35  ;;  %v3064_v41 = vpop.f32.mrb[7].mxu1 }
 0xcb6   : > { %v1251_v42 = vmul.f32 0.5, %v1250_v39 }
 0xcb8   : > { %v1252_v4 = vsel %vm4571_vm5, %v1250_v39, %v1251_v42 }
 0xcb9   : > { %4001 = vtanh.f32 %v1252_v4 }
 0xcc3   : > { %v4002_v43 = vpop.eup %4001 }
 0xcc4   : > { %v1254_v37 = vmul.f32 0.5, %v4002_v43 }
 0xcc6   : > { %v1255_v44 = vadd.f32 0.5, %v1254_v37 }
 0xcc8   : > { %v1256_v23 = vsel %vm4571_vm5, %v4002_v43, %v1255_v44 }
 0xcc9   : > { %1257 = vrot.lane.b32.xlu0 %v1256_v23, %s4205_s18  ;;  %v1260_v45 = vmul.f32 %v1256_v23, %v1175_v58 }
 0xccb   : > { %1261 = vrot.lane.b32.xlu1 %v1260_v45, %s4206_s24 }
 0xcd3   : > { %v4777_v6 = vpop.f32.mrb[8].mxu1 }
 0xcd4   : > { %v4779_v47 = vpop.f32.mrb[9].mxu1  ;;  %v1483_v0 = vadd.f32 %v4777_v6, %v4871_v40 }
 0xcd5   : > { %v1478_v5 = vadd.f32 %v4871_v40, %v4779_v47 }
 0xcd7   : > { %v4781_v48 = vpop.f32.mrb[10].mxu1 }
 0xcd8   : > { %v4783_v49 = vpop.f32.mrb[11].mxu1 }
 0xcdb   : > { %v4785_v13 = vpop.f32.mrb[12].mxu1 }
 0xcdc   : > { %v4787_v15 = vpop.f32.mrb[13].mxu1 }
 0xd3b   : > { %v1258_v21 = vpop.permute.xlu0 %1257 }
 0xd3c   : > { %v1259_v24 = vmul.f32 %v1258_v21, %v1256_v23 }
 0xd3d   : > { %v1262_v27 = vpop.permute.xlu1 %1261 }
 0xd3e   : > { %v1263_v30 = vadd.f32 %v1262_v27, %v1259_v24 }
 0xd40   : > { %4003 = vtanh.f32 %v1263_v30  ;;  %1268 = vrot.lane.b32.xlu1 %v1263_v30, %s4207_s27 }
 0xd4a   : > { %v4004_v56 = vpop.eup %4003 }
 0xd4b   : > { %1265 = vrot.lane.b32.xlu0 %v4004_v56, %s4206_s24 }
 0xdb2   : > { %v1269_v34 = vpop.permute.xlu1 %1268 }
 0xdbd   : > { %v1266_v18 = vpop.permute.xlu0 %1265 }
 0xdbe   : > { %v1267_v19 = vmul.f32 %v1266_v18, %v1256_v23 }
 0xdc0   : > { %3098 = vmatmul.mubr.f32.vlgmr.msra.gmra.mrb[14].mxu0 %v1267_v19  ;;  %3141 = vmatprep.mubr.f32.mxu1 %v1267_v19 }
 0xdc1   : > { %3685 = vmatpush3.bf16.msra.mxu0 %v4789_v33  ;;  %3176 = vmatprep.mubr.msk.f32.mxu0 %vm4203_vm0, %v4204_v9 }
 0xdc2   : > { %3686 = vmatprep.subr.bf16.mxu0 %v4202_v8 }
 0xdc5   : > { %3688 = vmatpush3.bf16.msra.mxu0 %v4794_v53 }
 0xdc6   : > { %3689 = vmatprep.subr.bf16.mxu0 %v4202_v8 }
 0xdc9   : > { %3691 = vmatpush3.bf16.msra.mxu0 %v4798_v55 }
 0xdca   : > { %3692 = vmatprep.subr.bf16.mxu0 %v4202_v8 }
 0xdcd   : > { %3694 = vmatpush3.bf16.msra.mxu0 %v4803_v60 }
 0xdce   : > { %3695 = vmatprep.subr.bf16.mxu0 %v4202_v8 }
 0xdd1   : > { %3697 = vmatpush3.bf16.msra.mxu0 %v4807_v63 }
 0xdd2   : > { %3698 = vmatprep.subr.bf16.mxu0 %v4202_v8 }
 0xdd5   : > { %3700 = vmatpush3.bf16.msra.mxu0 %v4811_v7 }
 0xdd6   : > { %3701 = vmatprep.subr.bf16.mxu0 %v4202_v8 }
 0xdd9   : > { %3703 = vmatpush3.bf16.msra.mxu0 %v4815_v14 }
 0xdda   : > { %3704 = vmatprep.subr.bf16.mxu0 %v4202_v8 }
 0xddd   : > { %3706 = vmatpush3.bf16.msra.mxu0 %v4819_v17 }
 0xdde   : > { %3731 = vmatprep.subr.bf16.mxu0 %v4202_v8 }
 0xde0   : > { %3177 = vmatmul.mubr.f32.vlgmr.msra.gmra.mrb[16].mxu0 %v4204_v9 }
 0xde1   : > { %3733 = vmatpush3.bf16.msra.mxu0 %v4789_v33  ;;  %3246 = vmatprep.mubr.msk.f32.mxu0 %vm4203_vm0, %v4204_v9 }
 0xde2   : > { %3734 = vmatprep.subr.bf16.mxu0 %v4202_v8 }
 0xde5   : > { %3736 = vmatpush3.bf16.msra.mxu0 %v4794_v53 }
 0xde6   : > { %3737 = vmatprep.subr.bf16.mxu0 %v4202_v8 }
 0xde9   : > { %3739 = vmatpush3.bf16.msra.mxu0 %v4798_v55 }
 0xdea   : > { %3740 = vmatprep.subr.bf16.mxu0 %v4202_v8 }
 0xded   : > { %3742 = vmatpush3.bf16.msra.mxu0 %v4803_v60 }
 0xdee   : > { %3743 = vmatprep.subr.bf16.mxu0 %v4202_v8 }
 0xdf1   : > { %3745 = vmatpush3.bf16.msra.mxu0 %v4807_v63 }
 0xdf2   : > { %3746 = vmatprep.subr.bf16.mxu0 %v4202_v8 }
 0xdf5   : > { %3748 = vmatpush3.bf16.msra.mxu0 %v4811_v7 }
 0xdf6   : > { %3749 = vmatprep.subr.bf16.mxu0 %v4202_v8 }
 0xdf9   : > { %3751 = vmatpush3.bf16.msra.mxu0 %v4815_v14 }
 0xdfa   : > { %3752 = vmatprep.subr.bf16.mxu0 %v4202_v8 }
 0xdfd   : > { %3754 = vmatpush3.bf16.msra.mxu0 %v4819_v17 }
 0xdfe   : > { %3779 = vmatprep.subr.bf16.mxu0 %v4202_v8 }
 0xe93   : > { %v1340_v22 = vpop.f32.mrb[14].mxu0 }
 0xe94   : > { %v1344_v25 = vadd.f32 %v1340_v22, %v605_v20  ;;  %v3099_v26 = vpop.f32.mrb[15].mxu0 }
 0xe96   : > { %v1345_v28 = vmul.f32 0.5, %v1344_v25 }
 0xe98   : > { %v1346_v29 = vsel %vm4571_vm5, %v1344_v25, %v1345_v28 }
 0xe99   : > { %4005 = vtanh.f32 %v1346_v29 }
 0xea3   : > { %v4006_v10 = vpop.eup %4005 }
 0xea4   : > { %v1348_v31 = vmul.f32 0.5, %v4006_v10 }
 0xea6   : > { %v1349_v32 = vadd.f32 0.5, %v1348_v31 }
 0xea8   : > { %v1350_v35 = vsel %vm4571_vm5, %v4006_v10, %v1349_v32 }
 0xea9   : > { %1351 = vrot.lane.b32.xlu0 %v1350_v35, %s4205_s18  ;;  %v1354_v38 = vmul.f32 %v1350_v35, %v1269_v34 }
 0xeab   : > { %1355 = vrot.lane.b32.xlu1 %v1354_v38, %s4206_s24 }
 0xeb3   : > { %v1591_v39 = vpop.f32.mrb[16].mxu0 }
 0xeb4   : > { %v1595_v41 = vadd.f32 %v1591_v39, %v1478_v5  ;;  %v3178_v42 = vpop.f32.mrb[17].mxu0 }
 0xeb6   : > { %v1596_v4 = vmul.f32 0.5, %v1595_v41 }
 0xeb8   : > { %v1597_v43 = vsel %vm4571_vm5, %v1595_v41, %v1596_v4 }
 0xeb9   : > { %4007 = vtanh.f32 %v1597_v43 }
 0xec3   : > { %v4008_v37 = vpop.eup %4007 }
 0xec4   : > { %v1599_v44 = vmul.f32 0.5, %v4008_v37 }
 0xec6   : > { %v1600_v58 = vadd.f32 0.5, %v1599_v44 }
 0xec8   : > { %v1601_v23 = vsel %vm4571_vm5, %v4008_v37, %v1600_v58 }
 0xec9   : > { %1602 = vrot.lane.b32.xlu0 %v1601_v23, %s4205_s18  ;;  %v1605_v45 = vmul.f32 0.0, %v1601_v23 }
 0xecb   : > { %1606 = vrot.lane.b32.xlu1 %v1605_v45, %s4206_s24 }
 0xf1b   : > { %v1352_v47 = vpop.permute.xlu0 %1351 }
 0xf1c   : > { %v1353_v21 = vmul.f32 %v1352_v47, %v1350_v35 }
 0xf1d   : > { %v1356_v24 = vpop.permute.xlu1 %1355 }
 0xf1e   : > { %v1357_v27 = vadd.f32 %v1356_v24, %v1353_v21 }
 0xf20   : > { %4009 = vtanh.f32 %v1357_v27 }
 0xf2a   : > { %v4010_v30 = vpop.eup %4009 }
 0xf2b   : > { %1359 = vrot.lane.b32.xlu0 %v4010_v30, %s4206_s24 }
 0xf3b   : > { %v1603_v50 = vpop.permute.xlu0 %1602 }
 0xf3c   : > { %v1604_v51 = vmul.f32 %v1603_v50, %v1601_v23  ;;  %v1493_v50 = vadd.f32 %v4781_v48, %v4871_v40 }
 0xf3d   : > { %v1607_v52 = vpop.permute.xlu1 %1606 }
 0xf3e   : > { %v1608_v36 = vadd.f32 %v1607_v52, %v1604_v51 }
 0xf40   : > { %4011 = vtanh.f32 %v1608_v36  ;;  %1613 = vrot.lane.b32.xlu0 %v1608_v36, %s4207_s27 }
 0xf4a   : > { %v4012_v3 = vpop.eup %4011 }
 0xf4b   : > { %1610 = vrot.lane.b32.xlu1 %v4012_v3, %s4206_s24 }
 0xf9d   : > { %v1360_v54 = vpop.permute.xlu0 %1359 }
 0xf9e   : > { %v1361_v56 = vmul.f32 %v1360_v54, %v1350_v35  ;;  %v1488_v35 = vadd.f32 %v4871_v40, %v4783_v49 }
 0xfa0   : > { %3142 = vmatmul.mubr.f32.gmra.mrb[14].mxu1 %v1361_v56 }
 0xfa1   : > { %3211 = vmatprep.mubr.msk.f32.mxu1 %vm4203_vm0, %v4204_v9 }
 0xfb2   : > { %v1614_v22 = vpop.permute.xlu0 %1613 }
 0xfbd   : > { %v1611_v57 = vpop.permute.xlu1 %1610 }
 0xfbe   : > { %v1612_v59 = vmul.f32 %v1611_v57, %v1601_v23 }
 0xfc0   : > { %3212 = vmatmul.mubr.f32.vlgmr.msra.gmra.mrb[16].mxu1 %v1612_v59 }
 0xfc1   : > { %3757 = vmatpush3.bf16.msra.mxu1 %v4789_v33  ;;  %3281 = vmatprep.mubr.msk.f32.mxu1 %vm4203_vm0, %v4204_v9 }
 0xfc2   : > { %3758 = vmatprep.subr.bf16.mxu1 %v4202_v8 }
 0xfc5   : > { %3760 = vmatpush3.bf16.msra.mxu1 %v4794_v53 }
 0xfc6   : > { %3761 = vmatprep.subr.bf16.mxu1 %v4202_v8 }
 0xfc9   : > { %3763 = vmatpush3.bf16.msra.mxu1 %v4798_v55 }
 0xfca   : > { %3764 = vmatprep.subr.bf16.mxu1 %v4202_v8 }
 0xfcd   : > { %3766 = vmatpush3.bf16.msra.mxu1 %v4803_v60 }
 0xfce   : > { %3767 = vmatprep.subr.bf16.mxu1 %v4202_v8 }
 0xfd1   : > { %3769 = vmatpush3.bf16.msra.mxu1 %v4807_v63 }
 0xfd2   : > { %3770 = vmatprep.subr.bf16.mxu1 %v4202_v8 }
 0xfd5   : > { %3772 = vmatpush3.bf16.msra.mxu1 %v4811_v7 }
 0xfd6   : > { %3773 = vmatprep.subr.bf16.mxu1 %v4202_v8 }
 0xfd9   : > { %3775 = vmatpush3.bf16.msra.mxu1 %v4815_v14 }
 0xfda   : > { %3776 = vmatprep.subr.bf16.mxu1 %v4202_v8 }
 0xfdd   : > { %3778 = vmatpush3.bf16.msra.mxu1 %v4819_v17 }
 0xfde   : > { %3803 = vmatprep.subr.bf16.mxu1 %v4202_v8 }
0x1073   : > { %v4904_v61 = vpop.f32.mrb[14].mxu1 }
0x1074   : > { %v4906_v62 = vpop.f32.mrb[15].mxu1 }
0x1093   : > { %v1682_v2 = vpop.f32.mrb[16].mxu1 }
0x1094   : > { %v1686_v11 = vadd.f32 %v1682_v2, %v1483_v0  ;;  %v3213_v12 = vpop.f32.mrb[17].mxu1 }
0x1096   : > { %v1687_v16 = vmul.f32 0.5, %v1686_v11 }
0x1098   : > { %v1688_v1 = vsel %vm4571_vm5, %v1686_v11, %v1687_v16 }
0x1099   : > { %4013 = vtanh.f32 %v1688_v1 }
0x10a3   : > { %v4014_v18 = vpop.eup %4013 }
0x10a4   : > { %v1690_v19 = vmul.f32 0.5, %v4014_v18 }
0x10a6   : > { %v1691_v20 = vadd.f32 0.5, %v1690_v19 }
0x10a8   : > { %v1692_v25 = vsel %vm4571_vm5, %v4014_v18, %v1691_v20 }
0x10a9   : > { %1693 = vrot.lane.b32.xlu1 %v1692_v25, %s4205_s18  ;;  %v1696_v26 = vmul.f32 %v1692_v25, %v1614_v22  ;;  %v1498_v22 = vadd.f32 %v4871_v40, %v4787_v15 }
0x10ab   : > { %1697 = vrot.lane.b32.xlu0 %v1696_v26, %s4206_s24 }
0x111b   : > { %v1694_v6 = vpop.permute.xlu1 %1693 }
0x111c   : > { %v1695_v28 = vmul.f32 %v1694_v6, %v1692_v25 }
0x111d   : > { %v1698_v29 = vpop.permute.xlu0 %1697 }
0x111e   : > { %v1699_v10 = vadd.f32 %v1698_v29, %v1695_v28 }
0x1120   : > { %4015 = vtanh.f32 %v1699_v10  ;;  %1704 = vrot.lane.b32.xlu0 %v1699_v10, %s4207_s27 }
0x112a   : > { %v4016_v31 = vpop.eup %4015 }
0x112b   : > { %1701 = vrot.lane.b32.xlu1 %v4016_v31, %s4206_s24 }
0x1192   : > { %v1705_v44 = vpop.permute.xlu0 %1704 }
0x119d   : > { %v1702_v32 = vpop.permute.xlu1 %1701 }
0x119e   : > { %v1703_v34 = vmul.f32 %v1702_v32, %v1692_v25 }
0x11a0   : > { %3247 = vmatmul.mubr.f32.vlgmr.msra.gmra.mrb[18].mxu0 %v1703_v34 }
0x11a1   : > { %3781 = vmatpush3.bf16.msra.mxu0 %v4789_v33  ;;  %3316 = vmatprep.mubr.msk.f32.mxu0 %vm4203_vm0, %v4204_v9 }
0x11a2   : > { %3782 = vmatprep.subr.bf16.mxu0 %v4202_v8 }
0x11a5   : > { %3784 = vmatpush3.bf16.msra.mxu0 %v4794_v53 }
0x11a6   : > { %3785 = vmatprep.subr.bf16.mxu0 %v4202_v8 }
0x11a9   : > { %3787 = vmatpush3.bf16.msra.mxu0 %v4798_v55 }
0x11aa   : > { %3788 = vmatprep.subr.bf16.mxu0 %v4202_v8 }
0x11ad   : > { %3790 = vmatpush3.bf16.msra.mxu0 %v4803_v60 }
0x11ae   : > { %3791 = vmatprep.subr.bf16.mxu0 %v4202_v8 }
0x11b1   : > { %3793 = vmatpush3.bf16.msra.mxu0 %v4807_v63 }
0x11b2   : > { %3794 = vmatprep.subr.bf16.mxu0 %v4202_v8 }
0x11b5   : > { %3796 = vmatpush3.bf16.msra.mxu0 %v4811_v7 }
0x11b6   : > { %3797 = vmatprep.subr.bf16.mxu0 %v4202_v8 }
0x11b9   : > { %3799 = vmatpush3.bf16.msra.mxu0 %v4815_v14 }
0x11ba   : > { %3800 = vmatprep.subr.bf16.mxu0 %v4202_v8 }
0x11bd   : > { %3802 = vmatpush3.bf16.msra.mxu0 %v4819_v17 }
0x11be   : > { %3827 = vmatprep.subr.bf16.mxu0 %v4202_v8 }
0x1273   : > { %v1773_v38 = vpop.f32.mrb[18].mxu0 }
0x1274   : > { %v1777_v5 = vadd.f32 %v1773_v38, %v1488_v35  ;;  %v3248_v39 = vpop.f32.mrb[19].mxu0 }
0x1276   : > { %v1778_v41 = vmul.f32 0.5, %v1777_v5 }
0x1278   : > { %v1779_v42 = vsel %vm4571_vm5, %v1777_v5, %v1778_v41 }
0x1279   : > { %4017 = vtanh.f32 %v1779_v42 }
0x1283   : > { %v4018_v4 = vpop.eup %4017 }
0x1284   : > { %v1781_v43 = vmul.f32 0.5, %v4018_v4 }
0x1286   : > { %v1782_v37 = vadd.f32 0.5, %v1781_v43 }
0x1288   : > { %v1783_v58 = vsel %vm4571_vm5, %v4018_v4, %v1782_v37 }
0x1289   : > { %1784 = vrot.lane.b32.xlu1 %v1783_v58, %s4205_s18  ;;  %v1787_v23 = vmul.f32 %v1783_v58, %v1705_v44 }
0x128b   : > { %1788 = vrot.lane.b32.xlu0 %v1787_v23, %s4206_s24 }
0x12fb   : > { %v1785_v49 = vpop.permute.xlu1 %1784 }
0x12fc   : > { %v1786_v45 = vmul.f32 %v1785_v49, %v1783_v58 }
0x12fd   : > { %v1789_v47 = vpop.permute.xlu0 %1788 }
0x12fe   : > { %v1790_v21 = vadd.f32 %v1789_v47, %v1786_v45 }
0x1300   : > { %4019 = vtanh.f32 %v1790_v21  ;;  %1795 = vrot.lane.b32.xlu0 %v1790_v21, %s4207_s27 }
0x130a   : > { %v4020_v24 = vpop.eup %4019 }
0x130b   : > { %1792 = vrot.lane.b32.xlu1 %v4020_v24, %s4206_s24 }
0x1372   : > { %v1796_v0 = vpop.permute.xlu0 %1795 }
0x137d   : > { %v1793_v27 = vpop.permute.xlu1 %1792 }
0x137e   : > { %v1794_v30 = vmul.f32 %v1793_v27, %v1783_v58 }
0x1380   : > { %3282 = vmatmul.mubr.f32.vlgmr.msra.gmra.mrb[18].mxu1 %v1794_v30  ;;  %v1508_v30 = vadd.f32 %v4871_v40, %v4906_v62 }
0x1381   : > { %3805 = vmatpush3.bf16.msra.mxu1 %v4789_v33  ;;  %3351 = vmatprep.mubr.msk.f32.mxu1 %vm4203_vm0, %v4204_v9 }
0x1382   : > { %3806 = vmatprep.subr.bf16.mxu1 %v4202_v8 }
0x1385   : > { %3808 = vmatpush3.bf16.msra.mxu1 %v4794_v53 }
0x1386   : > { %3809 = vmatprep.subr.bf16.mxu1 %v4202_v8 }
0x1389   : > { %3811 = vmatpush3.bf16.msra.mxu1 %v4798_v55 }
0x138a   : > { %3812 = vmatprep.subr.bf16.mxu1 %v4202_v8 }
0x138d   : > { %3814 = vmatpush3.bf16.msra.mxu1 %v4803_v60 }
0x138e   : > { %3815 = vmatprep.subr.bf16.mxu1 %v4202_v8 }
0x1391   : > { %3817 = vmatpush3.bf16.msra.mxu1 %v4807_v63 }
0x1392   : > { %3818 = vmatprep.subr.bf16.mxu1 %v4202_v8 }
0x1395   : > { %3820 = vmatpush3.bf16.msra.mxu1 %v4811_v7 }
0x1396   : > { %3821 = vmatprep.subr.bf16.mxu1 %v4202_v8 }
0x1399   : > { %3823 = vmatpush3.bf16.msra.mxu1 %v4815_v14 }
0x139a   : > { %3824 = vmatprep.subr.bf16.mxu1 %v4202_v8 }
0x139d   : > { %3826 = vmatpush3.bf16.msra.mxu1 %v4819_v17 }
0x139e   : > { %3851 = vmatprep.subr.bf16.mxu1 %v4202_v8 }
0x1453   : > { %v1864_v51 = vpop.f32.mrb[18].mxu1 }
0x1454   : > { %v1868_v52 = vadd.f32 %v1864_v51, %v1493_v50  ;;  %v3283_v36 = vpop.f32.mrb[19].mxu1 }
0x1456   : > { %v1869_v3 = vmul.f32 0.5, %v1868_v52 }
0x1458   : > { %v1870_v54 = vsel %vm4571_vm5, %v1868_v52, %v1869_v3 }
0x1459   : > { %4021 = vtanh.f32 %v1870_v54 }
0x1463   : > { %v4022_v56 = vpop.eup %4021 }
0x1464   : > { %v1872_v57 = vmul.f32 0.5, %v4022_v56 }
0x1466   : > { %v1873_v59 = vadd.f32 0.5, %v1872_v57 }
0x1468   : > { %v1874_v2 = vsel %vm4571_vm5, %v4022_v56, %v1873_v59 }
0x1469   : > { %1875 = vrot.lane.b32.xlu1 %v1874_v2, %s4205_s18  ;;  %v1878_v11 = vmul.f32 %v1874_v2, %v1796_v0 }
0x146b   : > { %1879 = vrot.lane.b32.xlu0 %v1878_v11, %s4206_s24 }
0x14db   : > { %v1876_v48 = vpop.permute.xlu1 %1875 }
0x14dc   : > { %v1877_v12 = vmul.f32 %v1876_v48, %v1874_v2 }
0x14dd   : > { %v1880_v16 = vpop.permute.xlu0 %1879 }
0x14de   : > { %v1881_v1 = vadd.f32 %v1880_v16, %v1877_v12 }
0x14e0   : > { %4023 = vtanh.f32 %v1881_v1  ;;  %1886 = vrot.lane.b32.xlu0 %v1881_v1, %s4207_s27 }
0x14ea   : > { %v4024_v18 = vpop.eup %4023 }
0x14eb   : > { %1883 = vrot.lane.b32.xlu1 %v4024_v18, %s4206_s24  ;;  %v1513_v18 = vadd.f32 %v4904_v61, %v4871_v40  ;;  %v2251_v61 = vld [vmem:[#allocation10 + $0x8] sm:$0xff] }
0x1552   : > { %v1887_v34 = vpop.permute.xlu0 %1886 }
0x155d   : > { %v1884_v19 = vpop.permute.xlu1 %1883 }
0x155e   : > { %v1885_v20 = vmul.f32 %v1884_v19, %v1874_v2 }
0x1560   : > { %3317 = vmatmul.mubr.f32.vlgmr.msra.gmra.mrb[20].mxu0 %v1885_v20 }
0x1561   : > { %3829 = vmatpush3.bf16.msra.mxu0 %v4789_v33  ;;  %3386 = vmatprep.mubr.msk.f32.mxu0 %vm4203_vm0, %v4204_v9 }
0x1562   : > { %3830 = vmatprep.subr.bf16.mxu0 %v4202_v8 }
0x1565   : > { %3832 = vmatpush3.bf16.msra.mxu0 %v4794_v53 }
0x1566   : > { %3833 = vmatprep.subr.bf16.mxu0 %v4202_v8 }
0x1569   : > { %3835 = vmatpush3.bf16.msra.mxu0 %v4798_v55 }
0x156a   : > { %3836 = vmatprep.subr.bf16.mxu0 %v4202_v8 }
0x156d   : > { %3838 = vmatpush3.bf16.msra.mxu0 %v4803_v60 }
0x156e   : > { %3839 = vmatprep.subr.bf16.mxu0 %v4202_v8 }
0x1571   : > { %3841 = vmatpush3.bf16.msra.mxu0 %v4807_v63 }
0x1572   : > { %3842 = vmatprep.subr.bf16.mxu0 %v4202_v8 }
0x1575   : > { %3844 = vmatpush3.bf16.msra.mxu0 %v4811_v7 }
0x1576   : > { %3845 = vmatprep.subr.bf16.mxu0 %v4202_v8 }
0x1579   : > { %3847 = vmatpush3.bf16.msra.mxu0 %v4815_v14 }
0x157a   : > { %3848 = vmatprep.subr.bf16.mxu0 %v4202_v8 }
0x157d   : > { %3850 = vmatpush3.bf16.msra.mxu0 %v4819_v17 }
0x157e   : > { %3875 = vmatprep.subr.bf16.mxu0 %v4202_v8 }
0x1633   : > { %v1955_v25 = vpop.f32.mrb[20].mxu0 }
0x1634   : > { %v1959_v26 = vadd.f32 %v1955_v25, %v1498_v22  ;;  %v3318_v6 = vpop.f32.mrb[21].mxu0 }
0x1636   : > { %v1960_v28 = vmul.f32 0.5, %v1959_v26 }
0x1638   : > { %v1961_v29 = vsel %vm4571_vm5, %v1959_v26, %v1960_v28 }
0x1639   : > { %4025 = vtanh.f32 %v1961_v29 }
0x1643   : > { %v4026_v10 = vpop.eup %4025 }
0x1644   : > { %v1963_v31 = vmul.f32 0.5, %v4026_v10 }
0x1646   : > { %v1964_v32 = vadd.f32 0.5, %v1963_v31 }
0x1648   : > { %v1965_v35 = vsel %vm4571_vm5, %v4026_v10, %v1964_v32 }
0x1649   : > { %1966 = vrot.lane.b32.xlu1 %v1965_v35, %s4205_s18  ;;  %v1969_v38 = vmul.f32 %v1965_v35, %v1887_v34  ;;  %v2252_v34 = vld [vmem:[#allocation10 + $0x10] sm:$0xff] }
0x164b   : > { %1970 = vrot.lane.b32.xlu0 %v1969_v38, %s4206_s24  ;;  %v2253_v38 = vld [vmem:[#allocation10 + $0x18] sm:$0xff] }
0x16bb   : > { %v1967_v15 = vpop.permute.xlu1 %1966 }
0x16bc   : > { %v1968_v5 = vmul.f32 %v1967_v15, %v1965_v35  ;;  %v3879_v15 = vpack.c.bf16 %v2253_v38, %v2252_v34 }
0x16bd   : > { %v1971_v39 = vpop.permute.xlu0 %1970 }
0x16be   : > { %v1972_v41 = vadd.f32 %v1971_v39, %v1968_v5  ;;  %v2254_v5 = vld [vmem:[#allocation10 + $0x20] sm:$0xff]  ;;  %v2255_v39 = vld [vmem:[#allocation10 + $0x28] sm:$0xff] }
0x16c0   : > { %4027 = vtanh.f32 %v1972_v41  ;;  %1977 = vrot.lane.b32.xlu0 %v1972_v41, %s4207_s27  ;;  %v3882_v41 = vpack.c.bf16 %v2255_v39, %v2254_v5 }
0x16ca   : > { %v4028_v42 = vpop.eup %4027 }
0x16cb   : > { %1974 = vrot.lane.b32.xlu1 %v4028_v42, %s4206_s24  ;;  %v2257_v42 = vld [vmem:[#allocation10 + $0x38] sm:$0xff] }
0x1732   : > { %v1978_v23 = vpop.permute.xlu0 %1977 }
0x173d   : > { %v1975_v4 = vpop.permute.xlu1 %1974 }
0x173e   : > { %v1976_v43 = vmul.f32 %v1975_v4, %v1965_v35  ;;  %v3885_v4 = vpack.c.bf16 %v2257_v42, %v2256_v46 }
0x1740   : > { %3352 = vmatmul.mubr.f32.vlgmr.msra.gmra.mrb[20].mxu1 %v1976_v43  ;;  %v2258_v43 = vld [vmem:[#allocation10 + $0x40] sm:$0xff] }
0x1741   : > { %3853 = vmatpush3.bf16.msra.mxu1 %v4789_v33  ;;  %3421 = vmatprep.mubr.msk.f32.mxu1 %vm4203_vm0, %v4204_v9  ;;  %v1503_v33 = vadd.f32 %v4785_v13, %v4871_v40  ;;  %v2250_v40 = vld [vmem:[#allocation10] sm:$0xff] }
0x1742   : > { %3854 = vmatprep.subr.bf16.mxu1 %v4202_v8  ;;  %v3876_v35 = vpack.c.bf16 %v2251_v61, %v2250_v40 }
0x1745   : > { %3856 = vmatpush3.bf16.msra.mxu1 %v4794_v53 }
0x1746   : > { %3857 = vmatprep.subr.bf16.mxu1 %v4202_v8 }
0x1749   : > { %3859 = vmatpush3.bf16.msra.mxu1 %v4798_v55 }
0x174a   : > { %3860 = vmatprep.subr.bf16.mxu1 %v4202_v8 }
0x174d   : > { %3862 = vmatpush3.bf16.msra.mxu1 %v4803_v60 }
0x174e   : > { %3863 = vmatprep.subr.bf16.mxu1 %v4202_v8 }
0x1751   : > { %3865 = vmatpush3.bf16.msra.mxu1 %v4807_v63 }
0x1752   : > { %3866 = vmatprep.subr.bf16.mxu1 %v4202_v8 }
0x1755   : > { %3868 = vmatpush3.bf16.msra.mxu1 %v4811_v7 }
0x1756   : > { %3869 = vmatprep.subr.bf16.mxu1 %v4202_v8 }
0x1759   : > { %3871 = vmatpush3.bf16.msra.mxu1 %v4815_v14 }
0x175a   : > { %3872 = vmatprep.subr.bf16.mxu1 %v4202_v8 }
0x175d   : > { %3874 = vmatpush3.bf16.msra.mxu1 %v4819_v17 }
0x1813   : > { %v2046_v53 = vpop.f32.mrb[20].mxu1 }
0x1814   : > { %v2050_v55 = vadd.f32 %v2046_v53, %v1503_v33  ;;  %v3353_v60 = vpop.f32.mrb[21].mxu1  ;;  %v2259_v33 = vld [vmem:[#allocation10 + $0x48] sm:$0xff] }
0x1815   : > { %v3888_v53 = vpack.c.bf16 %v2259_v33, %v2258_v43  ;;  %v2261_v60 = vld [vmem:[#allocation10 + $0x58] sm:$0xff] }
0x1816   : > { %v2051_v37 = vmul.f32 0.5, %v2050_v55 }
0x1818   : > { %v2052_v63 = vsel %vm4571_vm5, %v2050_v55, %v2051_v37  ;;  %v2260_v55 = vld [vmem:[#allocation10 + $0x50] sm:$0xff] }
0x1819   : > { %4029 = vtanh.f32 %v2052_v63  ;;  %v3891_v37 = vpack.c.bf16 %v2261_v60, %v2260_v55  ;;  %v2262_v63 = vld [vmem:[#allocation10 + $0x60] sm:$0xff] }
0x1823   : > { %v4030_v7 = vpop.eup %4029 }
0x1824   : > { %v2054_v44 = vmul.f32 0.5, %v4030_v7 }
0x1826   : > { %v2055_v58 = vadd.f32 0.5, %v2054_v44 }
0x1828   : > { %v2056_v14 = vsel %vm4571_vm5, %v4030_v7, %v2055_v58  ;;  %v2263_v7 = vld [vmem:[#allocation10 + $0x68] sm:$0xff]  ;;  %v2264_v58 = vld [vmem:[#allocation10 + $0x70] sm:$0xff] }
0x1829   : > { %2057 = vrot.lane.b32.xlu1 %v2056_v14, %s4205_s18  ;;  %v2060_v17 = vmul.f32 %v2056_v14, %v1978_v23  ;;  %v3894_v44 = vpack.c.bf16 %v2263_v7, %v2262_v63  ;;  %v2265_v23 = vld [vmem:[#allocation10 + $0x78] sm:$0xff] }
0x182b   : > { %2061 = vrot.lane.b32.xlu0 %v2060_v17, %s4206_s24 }
0x189b   : > { %v2058_v13 = vpop.permute.xlu1 %2057 }
0x189c   : > { %v2059_v49 = vmul.f32 %v2058_v13, %v2056_v14 }
0x189d   : > { %v2062_v45 = vpop.permute.xlu0 %2061 }
0x189e   : > { %v2063_v47 = vadd.f32 %v2062_v45, %v2059_v49 }
0x18a0   : > { %4031 = vtanh.f32 %v2063_v47  ;;  %2068 = vrot.lane.b32.xlu0 %v2063_v47, %s4207_s27 }
0x18aa   : > { %v4032_v21 = vpop.eup %4031 }
0x18ab   : > { %2065 = vrot.lane.b32.xlu1 %v4032_v21, %s4206_s24 }
0x1912   : > { %v2069_v59 = vpop.permute.xlu0 %2068 }
0x191d   : > { %v2066_v24 = vpop.permute.xlu1 %2065 }
0x191e   : > { %v2067_v27 = vmul.f32 %v2066_v24, %v2056_v14  ;;  %v3897_v14 = vpack.c.bf16 %v2265_v23, %v2264_v58 }
0x1920   : > { %3387 = vmatmul.mubr.f32.vlgmr.msra.gmra.mrb[22].mxu0 %v2067_v27  ;;  %v2479_v27 = vld [vmem:[%s5147_s30] ss:$0 sm:$0xff] }
0x1921   : > { %3456 = vmatprep.mubr.msk.f32.mxu0 %vm4203_vm0, %v4204_v9  ;;  %3877 = vmatpush3.bf16.msra.mxu0 %v3876_v35 }
0x1922   : > { %3878 = vmatprep.subr.bf16.mxu0 %v4202_v8 }
0x1925   : > { %3880 = vmatpush3.bf16.msra.mxu0 %v3879_v15 }
0x1926   : > { %3881 = vmatprep.subr.bf16.mxu0 %v4202_v8 }
0x1929   : > { %3883 = vmatpush3.bf16.msra.mxu0 %v3882_v41 }
0x192a   : > { %3884 = vmatprep.subr.bf16.mxu0 %v4202_v8 }
0x192d   : > { %3886 = vmatpush3.bf16.msra.mxu0 %v3885_v4 }
0x192e   : > { %3887 = vmatprep.subr.bf16.mxu0 %v4202_v8 }
0x1931   : > { %3889 = vmatpush3.bf16.msra.mxu0 %v3888_v53 }
0x1932   : > { %3890 = vmatprep.subr.bf16.mxu0 %v4202_v8 }
0x1935   : > { %3892 = vmatpush3.bf16.msra.mxu0 %v3891_v37 }
0x1936   : > { %3893 = vmatprep.subr.bf16.mxu0 %v4202_v8 }
0x1939   : > { %3895 = vmatpush3.bf16.msra.mxu0 %v3894_v44 }
0x193a   : > { %3896 = vmatprep.subr.bf16.mxu0 %v4202_v8 }
0x193d   : > { %3898 = vmatpush3.bf16.msra.mxu0 %v3897_v14 }
0x19f3   : > { %v2137_v50 = vpop.f32.mrb[22].mxu0 }
0x19f4   : > { %v2141_v51 = vadd.f32 %v2137_v50, %v1508_v30  ;;  %v3388_v52 = vpop.f32.mrb[23].mxu0 }
0x19f6   : > { %v2142_v36 = vmul.f32 0.5, %v2141_v51 }
0x19f8   : > { %v2143_v3 = vsel %vm4571_vm5, %v2141_v51, %v2142_v36 }
0x19f9   : > { %4033 = vtanh.f32 %v2143_v3 }
0x1a03   : > { %v4034_v54 = vpop.eup %4033 }
0x1a04   : > { %v2145_v56 = vmul.f32 0.5, %v4034_v54 }
0x1a06   : > { %v2146_v57 = vadd.f32 0.5, %v2145_v56 }
0x1a08   : > { %v2147_v0 = vsel %vm4571_vm5, %v4034_v54, %v2146_v57 }
0x1a09   : > { %2148 = vrot.lane.b32.xlu1 %v2147_v0, %s4205_s18  ;;  %v2151_v9 = vmul.f32 %v2147_v0, %v2069_v59 }
0x1a0b   : > { %2152 = vrot.lane.b32.xlu0 %v2151_v9, %s4206_s24 }
0x1a7b   : > { %v2149_v62 = vpop.permute.xlu1 %2148 }
0x1a7c   : > { %v2150_v2 = vmul.f32 %v2149_v62, %v2147_v0 }
0x1a7d   : > { %v2153_v11 = vpop.permute.xlu0 %2152 }
0x1a7e   : > { %v2154_v48 = vadd.f32 %v2153_v11, %v2150_v2 }
0x1a80   : > { %4035 = vtanh.f32 %v2154_v48  ;;  %2159 = vrot.lane.b32.xlu0 %v2154_v48, %s4207_s27 }
0x1a8a   : > { %v4036_v12 = vpop.eup %4035 }
0x1a8b   : > { %2156 = vrot.lane.b32.xlu1 %v4036_v12, %s4206_s24 }
0x1af2   : > { %v2160_v10 = vpop.permute.xlu0 %2159 }
0x1afd   : > { %v2157_v16 = vpop.permute.xlu1 %2156 }
0x1afe   : > { %v2158_v1 = vmul.f32 %v2157_v16, %v2147_v0 }
0x1b00   : > { %3422 = vmatmul.mubr.f32.vlgmr.msra.gmra.mrb[22].mxu1 %v2158_v1 }
0x1bd3   : > { %v2228_v19 = vpop.f32.mrb[22].mxu1 }
0x1bd4   : > { %v2232_v20 = vadd.f32 %v2228_v19, %v1513_v18  ;;  %v3423_v22 = vpop.f32.mrb[23].mxu1 }
0x1bd6   : > { %v2233_v25 = vmul.f32 0.5, %v2232_v20 }
0x1bd8   : > { %v2234_v26 = vsel %vm4571_vm5, %v2232_v20, %v2233_v25 }
0x1bd9   : > { %4037 = vtanh.f32 %v2234_v26 }
0x1be3   : > { %v4038_v6 = vpop.eup %4037 }
0x1be4   : > { %v2236_v28 = vmul.f32 0.5, %v4038_v6 }
0x1be6   : > { %v2237_v29 = vadd.f32 0.5, %v2236_v28 }
0x1be8   : > { %v2238_v31 = vsel %vm4571_vm5, %v4038_v6, %v2237_v29 }
0x1be9   : > { %2239 = vrot.lane.b32.xlu1 %v2238_v31, %s4205_s18  ;;  %v2242_v32 = vmul.f32 %v2238_v31, %v2160_v10  ;;  %s4125_s18 = scalar_lea.vmem %s5067_s29, 128 }
0x1bea   : > { %p4126_p8 = scmp.ne.s32.totalorder %s5067_s29, %s4125_s18 }
0x1beb   : > { %2243 = vrot.lane.b32.xlu0 %v2242_v32, %s4206_s24 }
0x1bec   : > { %p4127_p13 = pnand %p4126_p8, %p5149_p9 }
0x1bee   : > { %p4128_p1 = pneg %p4127_p13 }
0x1c5b   : > { %v2240_v17 = vpop.permute.xlu1 %2239 }
0x1c5c   : > { %v2241_v13 = vmul.f32 %v2240_v17, %v2238_v31 }
0x1c5d   : > { %v2244_v49 = vpop.permute.xlu0 %2243 }
0x1c5e   : > { %v2245_v45 = vadd.f32 %v2244_v49, %v2241_v13 }
0x1c60   : > { %4039 = vtanh.f32 %v2245_v45 }
0x1c6a   : > { %v4040_v47 = vpop.eup %4039 }
0x1c6b   : > { %2247 = vrot.lane.b32.xlu1 %v4040_v47, %s4206_s24  ;;  %s4129_s24 = sshll.u32 %s4208_s13, 4  ;;  %s4130_s24 = int_to_ptr.vmem [resolvable:$false] %s4129_s24 }
0x1c6c   : > { %s4131_s27 = scalar_lea.vmem %s4130_s24, 256  ;;  %p4132_p3 = scmp.lt.s32.totalorder %s5067_s29, %s4130_s24 }
0x1c6d   : > { %p4133_p6 = scmp.lt.s32.totalorder %s4131_s27, %s4125_s18 }
0x1c6f   : > { %p4134_p10 = por %p4133_p6, %p4132_p3 }
0x1c71   : > { %p4135_p2 = pnand %p4134_p10, %p4128_p1 }
0x1cdd   : > { %v2248_v21 = vpop.permute.xlu1 %2247 }
0x1cde   : > { %v2249_v24 = vmul.f32 %v2248_v21, %v2238_v31 }
0x1ce0   : > { %3457 = vmatmul.mubr.f32.vlgmr.msra.gmra.mrb[24].mxu0 %v2249_v24 }
0x1db3   : > { %v2339_v8 = vpop.f32.mrb[24].mxu0 }
0x1db4   : > { %v2340_v30 = vadd.f32 %v2479_v27, %v2339_v8  ;;  %v3458_v50 = vpop.f32.mrb[25].mxu0 }
0x1db6   : > { %2343 = vst [vmem:[%s436_s17] sm:$0xff] %v2340_v30 }
0x1db7   : > { %4138 = shalt.err (!%p4135_p2)
}
0x1db8   : > { %s4139_s19 = scalar_lea.hbm %s5065_s26, 128  ;;  %s4143_s15 = scalar_lea.hbm %s5148_s23, 256 }
0x1db9   : > { %p4140_p5 = scmp.ne.s32.totalorder %s5065_s26, %s4139_s19  ;;  %p4144_p4 = scmp.lt.u32.totalorder %s5065_s26, %s5148_s23 }
0x1dba   : > { %p4145_p7 = scmp.lt.u32.totalorder %s4143_s15, %s4139_s19  ;;  %p4147_p13 = scmp.lt.u32.totalorder %s4139_s19, %s5065_s26 }
0x1dbb   : > { %p4141_p12 = pnand %p4140_p5, %p5149_p9 }
0x1dbc   : > { %p4146_p8 = por %p4145_p7, %p4144_p4 }
0x1dbd   : > { %p4142_p0 = pneg %p4141_p12 }
0x1dbe   : > { %p4148_p1 = por %p4147_p13, %p4146_p8 }
0x1dc0   : > { %p4149_p3 = pnand %p4148_p1, %p4142_p0 }
0x1dc2   : > { %4152 = shalt.err (!%p4149_p3)
}
0x1dc3   : > { %3911 = dma.vmem_to_hbm [thread:$0]  (%p5149_p9), %s5067_s29, 128, %s5065_s26, %s2345_s28  }
0x1dc4 PF: > { %s5150_s30 = sld [smem:[#allocation15_spill]]  ;;  %s5151_s21 = sld [smem:[#allocation18_spill]] }
0x1dca   : > { %s2370_s17 = sand.u32 1, %s5150_s30   ;;  %p5152_p6 = scmp.ne.s32.totalorder %s5151_s21, 0 }
0x1dcb   : > { %s2371_s14 = scalar_lea.sflag [#allocation7], %s2370_s17 }
0x1dcc   : > { %p3924_p10 = pnand %p2459_p11, %p5152_p6 }
0x1dce   : > { %4178 = dma.done.wait (!%p3924_p10), %s2371_s14, 128  }
0x1dcf   : > { %4180 = vsyncadd (!%p3924_p10), %s2371_s14, 4294967168  ;;  %s5153_s12 = sld [smem:[#allocation16_spill]]  ;;  %s5154_s22 = sld [smem:[#allocation17_spill]] }
0x1dd0   : > { %s5155_s30 = smov %s4187_s10  ;;  %s5156_s10 = smov %s4191_s11 }
0x1dd5   : > { %p21_p2 = scmp.ge.s32.totalorder %s5153_s12, 4   ;;  %s5157_s11 = smov %s5154_s22 }
0x1dd7   :  { %23 = sbr.rel (!%p21_p2) target bundleno = 8 (0x8), region = 161 }
0x1dde   :  { %2376 = vsyncpa [#allocation6], 1 }
0x1ddf   :  { %2378 = vsyncpa [#allocation6 + $0x1], 1 }
0x1de0   :  { %2379 = vsyncpa [#allocation9], 1 }
0x1de1   :  { %2380 = vsyncpa [#allocation7], 1 }
0x1de2   :  { %2382 = vsyncpa [#allocation7 + $0x1], 1 }

</bundles_post_ra>
